<compile_context>
chip_gen: v7x
topology: tpu7x:2x2x1
jax: 0.10.0
libtpu: 0.0.40
codegen_flags: <defaults>
</compile_context>

<pallas_src>
import functools

import jax
import jax.numpy as jnp
from jax import lax
from jax.experimental import pallas as pl
from jax.experimental.pallas import tpu as pltpu


# --------------------------------------------------------------------------
# tiling helpers
# --------------------------------------------------------------------------
def _row_tile(m, cap=1024, min_tile=128):
    """Largest row tile (multiple of 8, <= cap) dividing m, else m itself."""
    if m <= cap:
        return m
    t = cap - cap % 8
    while t >= min_tile:
        if m % t == 0:
            return t
        t -= 8
    return m


def _lane_tile(n, cap=1024):
    """Largest lane tile (multiple of 128, <= cap) dividing n, else n itself."""
    if n <= cap:
        return n
    t = cap - cap % 128
    while t >= 128:
        if n % t == 0:
            return t
        t -= 128
    return n


def _hardswish(x):
    return x * jnp.clip(x + 3.0, 0.0, 6.0) * (1.0 / 6.0)


# --------------------------------------------------------------------------
# Pallas kernels
# --------------------------------------------------------------------------
def _matmul_kernel(x_ref, w_ref, b_ref, o_ref, acc_ref, *, activation):
    """Tiled matmul with f32 VMEM accumulator; bias (+hardswish) on flush."""
    @pl.when(pl.program_id(2) == 0)
    def _():
        acc_ref[...] = jnp.zeros_like(acc_ref)

    acc_ref[...] += jnp.dot(x_ref[...], w_ref[...],
                            preferred_element_type=jnp.float32)

    @pl.when(pl.program_id(2) == pl.num_programs(2) - 1)
    def _():
        acc = acc_ref[...] + b_ref[...].astype(jnp.float32)
        if activation == "hardswish":
            acc = _hardswish(acc)
        o_ref[...] = acc.astype(o_ref.dtype)


def _ln_matmul_kernel(x_ref, g_ref, bln_ref, w_ref, b_ref, o_ref, *,
                      activation, eps):
    """Fused LayerNorm (f32 stats) -> bf16 matmul (+bias, +hardswish)."""
    x = x_ref[...].astype(jnp.float32)
    mean = jnp.mean(x, axis=-1, keepdims=True)
    var = jnp.mean(jnp.square(x - mean), axis=-1, keepdims=True)
    xn = (x - mean) * lax.rsqrt(var + eps)
    xn = xn * g_ref[...].astype(jnp.float32) + bln_ref[...].astype(jnp.float32)
    acc = jnp.dot(xn.astype(w_ref.dtype), w_ref[...],
                  preferred_element_type=jnp.float32)
    acc = acc + b_ref[...].astype(jnp.float32)
    if activation == "hardswish":
        acc = _hardswish(acc)
    o_ref[...] = acc.astype(o_ref.dtype)


def _attn_out_kernel(qkv_ref, res_ref, w_ref, b_ref, o_ref, *,
                     heads, dh, inner, scale):
    """All heads of one batch element: softmax attention + out-proj + residual."""
    qkv = qkv_ref[0]                       # (N, 3*inner), bf16
    w_out = w_ref[...]                     # (inner, D),  bf16
    d_out = w_out.shape[1]
    n = qkv.shape[0]
    q = qkv[:, :inner]
    k = qkv[:, inner:2 * inner]
    v = qkv[:, 2 * inner:]
    acc = jnp.zeros((n, d_out), jnp.float32)
    for h in range(heads):
        lo, hi = h * dh, (h + 1) * dh
        qh, kh, vh = q[:, lo:hi], k[:, lo:hi], v[:, lo:hi]
        # s = q @ k^T (contract last dims), f32 accumulate on the MXU.
        s = lax.dot_general(qh, kh, (((1,), (1,)), ((), ())),
                            preferred_element_type=jnp.float32) * scale
        s = s - jnp.max(s, axis=-1, keepdims=True)
        p = jnp.exp(s)
        p = p * pl.reciprocal(jnp.sum(p, axis=-1, keepdims=True), approx=True)
        oh = jnp.dot(p.astype(vh.dtype), vh, preferred_element_type=jnp.float32)
        # fold the output projection in per-head (sublane slice of w_out).
        acc = acc + jnp.dot(oh.astype(w_out.dtype), w_out[lo:hi, :],
                            preferred_element_type=jnp.float32)
    out = acc + b_ref[...].astype(jnp.float32) + res_ref[0].astype(jnp.float32)
    o_ref[0] = out.astype(o_ref.dtype)


def _dwconv3x3_kernel(xp_ref, w_ref, o_ref, *, H, W):
    """Depthwise 3x3, stride 1, padding 1 (input pre-padded), NHWC, f32 math."""
    xp = xp_ref[0].astype(jnp.float32)     # (H+2, W+2, C)
    w = w_ref[...].astype(jnp.float32)     # (3, 3, C)
    acc = xp[0:H, 0:W, :] * w[0, 0]
    for dy in range(3):
        for dx in range(3):
            if dy == 0 and dx == 0:
                continue
            acc = acc + xp[dy:dy + H, dx:dx + W, :] * w[dy, dx]
    o_ref[0] = acc.astype(o_ref.dtype)


def _pw_down_kernel(x_ref, res_ref, wpw_ref, wdn_ref, b_ref, o_ref):
    """hardswish(x @ w_pw) @ w_down + b_down + residual, fused."""
    h = jnp.dot(x_ref[...], wpw_ref[...], preferred_element_type=jnp.float32)
    h = _hardswish(h)
    out = jnp.dot(h.astype(wdn_ref.dtype), wdn_ref[...],
                  preferred_element_type=jnp.float32)
    out = out + b_ref[...].astype(jnp.float32) + res_ref[...].astype(jnp.float32)
    o_ref[...] = out.astype(o_ref.dtype)


# --------------------------------------------------------------------------
# Pallas wrappers
# --------------------------------------------------------------------------
def linear(x, w, b=None, *, activation=None, out_dtype=None):
    """x: (M, K) @ w: (K, N) + b. M/N/K tiled with f32 VMEM accumulator."""
    M, K = x.shape
    N = w.shape[1]
    out_dtype = out_dtype or x.dtype
    if b is None:
        b = jnp.zeros((N,), jnp.float32)
    tm, tn, tk = _row_tile(M), _lane_tile(N), _lane_tile(K)
    kern = functools.partial(_matmul_kernel, activation=activation)
    return pl.pallas_call(
        kern,
        out_shape=jax.ShapeDtypeStruct((M, N), out_dtype),
        grid=(M // tm, N // tn, K // tk),
        in_specs=[pl.BlockSpec((tm, tk), lambda i, j, k: (i, k)),
                  pl.BlockSpec((tk, tn), lambda i, j, k: (k, j)),
                  pl.BlockSpec((1, tn), lambda i, j, k: (0, j))],
        out_specs=pl.BlockSpec((tm, tn), lambda i, j, k: (i, j)),
        scratch_shapes=[pltpu.VMEM((tm, tn), jnp.float32)],
        compiler_params=pltpu.CompilerParams(
            dimension_semantics=("parallel", "parallel", "arbitrary")),
    )(x, w, b.reshape(1, N))


def ln_linear(x, gamma, beta, w, b=None, *, activation=None, out_dtype=None,
              eps=1e-5):
    """Fused LayerNorm + linear (+hardswish). x: (M, D), w: (D, N)."""
    M, D = x.shape
    N = w.shape[1]
    out_dtype = out_dtype or x.dtype
    if b is None:
        b = jnp.zeros((N,), jnp.float32)
    tm = _row_tile(M)
    kern = functools.partial(_ln_matmul_kernel, activation=activation, eps=eps)
    return pl.pallas_call(
        kern,
        out_shape=jax.ShapeDtypeStruct((M, N), out_dtype),
        grid=(M // tm,),
        in_specs=[pl.BlockSpec((tm, D), lambda i: (i, 0)),
                  pl.BlockSpec((1, D), lambda i: (0, 0)),
                  pl.BlockSpec((1, D), lambda i: (0, 0)),
                  pl.BlockSpec((D, N), lambda i: (0, 0)),
                  pl.BlockSpec((1, N), lambda i: (0, 0))],
        out_specs=pl.BlockSpec((tm, N), lambda i: (i, 0)),
        compiler_params=pltpu.CompilerParams(dimension_semantics=("parallel",)),
    )(x, gamma.reshape(1, D), beta.reshape(1, D), w, b.reshape(1, N))


def attention_out(qkv, x_res, w_out, b_out, heads, dim_head):
    """qkv: (B, N, 3*inner); returns x_res + out_proj(MHSA(qkv))  -> (B, N, D)."""
    B, N, _ = qkv.shape
    D = x_res.shape[-1]
    inner = heads * dim_head
    scale = dim_head ** -0.5
    kern = functools.partial(_attn_out_kernel, heads=heads, dh=dim_head,
                             inner=inner, scale=scale)
    return pl.pallas_call(
        kern,
        out_shape=jax.ShapeDtypeStruct((B, N, D), x_res.dtype),
        grid=(B,),
        in_specs=[pl.BlockSpec((1, N, 3 * inner), lambda b: (b, 0, 0)),
                  pl.BlockSpec((1, N, D), lambda b: (b, 0, 0)),
                  pl.BlockSpec((inner, D), lambda b: (0, 0)),
                  pl.BlockSpec((1, D), lambda b: (0, 0))],
        out_specs=pl.BlockSpec((1, N, D), lambda b: (b, 0, 0)),
        compiler_params=pltpu.CompilerParams(dimension_semantics=("parallel",)),
    )(qkv, x_res, w_out, b_out.reshape(1, D))


def dwconv3x3(x_nhwc, w_dw):
    """Depthwise 3x3 conv, stride 1, pad 1, no bias. x: (B,H,W,C), w: (3,3,C)."""
    B, H, W, C = x_nhwc.shape
    xp = jnp.pad(x_nhwc, ((0, 0), (1, 1), (1, 1), (0, 0)))
    kern = functools.partial(_dwconv3x3_kernel, H=H, W=W)
    return pl.pallas_call(
        kern,
        out_shape=jax.ShapeDtypeStruct((B, H, W, C), x_nhwc.dtype),
        grid=(B,),
        in_specs=[pl.BlockSpec((1, H + 2, W + 2, C), lambda b: (b, 0, 0, 0)),
                  pl.BlockSpec((3, 3, C), lambda b: (0, 0, 0))],
        out_specs=pl.BlockSpec((1, H, W, C), lambda b: (b, 0, 0, 0)),
        compiler_params=pltpu.CompilerParams(dimension_semantics=("parallel",)),
    )(xp, w_dw)


def pw_down_residual(x, residual, w_pw, w_down, b_down):
    """Fused: hardswish(x @ w_pw) @ w_down + b_down + residual."""
    M, Kh = x.shape
    D = w_down.shape[1]
    tm = _row_tile(M)
    return pl.pallas_call(
        _pw_down_kernel,
        out_shape=jax.ShapeDtypeStruct((M, D), residual.dtype),
        grid=(M // tm,),
        in_specs=[pl.BlockSpec((tm, Kh), lambda i: (i, 0)),
                  pl.BlockSpec((tm, D), lambda i: (i, 0)),
                  pl.BlockSpec((Kh, Kh), lambda i: (0, 0)),
                  pl.BlockSpec((Kh, D), lambda i: (0, 0)),
                  pl.BlockSpec((1, D), lambda i: (0, 0))],
        out_specs=pl.BlockSpec((tm, D), lambda i: (i, 0)),
        compiler_params=pltpu.CompilerParams(dimension_semantics=("parallel",)),
    )(x, residual, w_pw, w_down, b_down.reshape(1, D))


# --------------------------------------------------------------------------
# Model forward (glue in JAX, compute in Pallas)
# --------------------------------------------------------------------------
def localvit_forward(img, params, cfg):
    ps = cfg["patch_size"]
    heads, dim_head = cfg["heads"], cfg["dim_head"]
    B, C, Hi, Wi = img.shape
    h, w = Hi // ps, Wi // ps
    hw = h * w
    cdtype = jnp.bfloat16

    # Rearrange 'b c (h p1) (w p2) -> b (h w) (p1 p2 c)'
    x = img.reshape(B, C, h, ps, w, ps)
    x = jnp.transpose(x, (0, 2, 4, 3, 5, 1)).reshape(B, hw, ps * ps * C)
    x = x.astype(cdtype)

    # patch embedding
    D = params["w_patch"].shape[1]
    x = linear(x.reshape(B * hw, ps * ps * C),
               params["w_patch"], params["b_patch"]).reshape(B, hw, D)

    # cls token + positional embedding (emb_dropout = 0 -> identity)
    cls = jnp.broadcast_to(params["cls_token"].astype(cdtype), (B, 1, D))
    x = jnp.concatenate([cls, x], axis=1)
    n_tok = hw + 1
    x = x + params["pos_embedding"][:, :n_tok].astype(cdtype)

    inner = heads * dim_head
    for lp in params["layers"]:
        # ---- x = x + Attn(LN1(x)) : fused LN+qkv, fused attn+out+residual --
        qkv = ln_linear(x.reshape(B * n_tok, D), lp["ln1_g"], lp["ln1_b"],
                        lp["attn"]["w_qkv"]).reshape(B, n_tok, 3 * inner)
        x = attention_out(qkv, x, lp["attn"]["w_out"], lp["attn"]["b_out"],
                          heads, dim_head)

        # ---- patches = patches + ConvFF(LN2(patches)) ----------------------
        cls_tok = x[:, :1]
        patches = x[:, 1:]
        cp = lp["convff"]
        h1 = ln_linear(patches.reshape(B * hw, D), lp["ln2_g"], lp["ln2_b"],
                       cp["w_up"], cp["b_up"], activation="hardswish")
        hid = h1.shape[-1]
        dw = dwconv3x3(h1.reshape(B, h, w, hid), cp["w_dw"])
        patches = pw_down_residual(dw.reshape(B * hw, hid),
                                   patches.reshape(B * hw, D),
                                   cp["w_pw"], cp["w_down"], cp["b_down"])
        x = jnp.concatenate([cls_tok, patches.reshape(B, hw, D)], axis=1)

    # pool = 'cls'; mlp_head = LayerNorm + Linear fused into one kernel
    x_cls = x[:, 0]                                            # (B, D)
    logits = ln_linear(x_cls, params["head_ln_g"], params["head_ln_b"],
                       params["w_head"], params["b_head"],
                       out_dtype=jnp.float32)
    return logits


# --------------------------------------------------------------------------
# Deterministic parameter init (weights bf16 for MXU, LN/bias params f32)
# --------------------------------------------------------------------------
def init_params(key, cfg):
    dim = cfg["dim"]
    heads, dim_head = cfg["heads"], cfg["dim_head"]
    inner = heads * dim_head
    hid = dim * cfg["scale_dim"]
    patch_dim = cfg["in_channels"] * cfg["patch_size"] ** 2
    num_patches = (cfg["image_size"] // cfg["patch_size"]) ** 2

    keys = iter(jax.random.split(key, 16 + 16 * cfg["depth"]))

    def nrm(shape, std=0.05, dtype=jnp.bfloat16):
        return (jax.random.normal(next(keys), shape, jnp.float32) * std).astype(dtype)

    params = {
        "w_patch": nrm((patch_dim, dim)),
        "b_patch": nrm((dim,), dtype=jnp.float32),
        "pos_embedding": nrm((1, num_patches + 1, dim), std=0.2),
        "cls_token": nrm((1, 1, dim), std=0.2),
        "head_ln_g": jnp.ones((dim,), jnp.float32),
        "head_ln_b": jnp.zeros((dim,), jnp.float32),
        "w_head": nrm((dim, cfg["num_classes"])),
        "b_head": nrm((cfg["num_classes"],), dtype=jnp.float32),
        "layers": [],
    }
    for _ in range(cfg["depth"]):
        lp = {
            "ln1_g": jnp.ones((dim,), jnp.float32),
            "ln1_b": jnp.zeros((dim,), jnp.float32),
            "ln2_g": jnp.ones((dim,), jnp.float32),
            "ln2_b": jnp.zeros((dim,), jnp.float32),
            "attn": {
                "w_qkv": nrm((dim, 3 * inner)),       # to_qkv, bias=False
                "w_out": nrm((inner, dim)),
                "b_out": nrm((dim,), dtype=jnp.float32),
            },
            "convff": {
                "w_up": nrm((dim, hid)),
                "b_up": nrm((hid,), dtype=jnp.float32),
                "w_dw": nrm((3, 3, hid)),             # depthwise, bias=False
                "w_pw": nrm((hid, hid)),              # pointwise, bias=False
                "w_down": nrm((hid, dim)),
                "b_down": nrm((dim,), dtype=jnp.float32),
            },
        }
        params["layers"].append(lp)
    return params


# --------------------------------------------------------------------------
if __name__ == "__main__":
    cfg = dict(
        image_size=16,
        patch_size=4,
        num_classes=10,
        dim=32,
        depth=2,
        heads=2,
        dim_head=16,
        in_channels=3,
        scale_dim=2,
    )
    key = jax.random.PRNGKey(0)
    k_param, k_img = jax.random.split(key)
    params = init_params(k_param, cfg)
    img = jax.random.normal(k_img, (2, cfg["in_channels"], cfg["image_size"],
                                    cfg["image_size"]), jnp.float32)

    fwd = jax.jit(functools.partial(localvit_forward, cfg=cfg))
    logits = fwd(img, params)
    jax.block_until_ready(logits)
    assert logits.shape == (2, cfg["num_classes"])
    print("KERNEL_OK")
</pallas_src>

<mosaic_0001>
module attributes {stable_mosaic.version = 11 : i64} {
  func.func @_ln_matmul_kernel(%arg0: i32, %arg1: memref<34x32xbf16, #tpu.memory_space<vmem>>, %arg2: memref<1x32xf32, #tpu.memory_space<vmem>>, %arg3: memref<1x32xf32, #tpu.memory_space<vmem>>, %arg4: memref<32x96xbf16, #tpu.memory_space<vmem>>, %arg5: memref<1x96xf32, #tpu.memory_space<vmem>>, %arg6: memref<34x96xbf16, #tpu.memory_space<vmem>>) attributes {dimension_semantics = [#tpu.dimension_semantics<parallel>], iteration_bounds = array<i64: 1>, scalar_prefetch = 0 : i64, scratch_operands = 0 : i64, tpu.core_type = #tpu.core_type<tc>, window_params = [{transform_indices = @transform_0, window_bounds = array<i64: 34, 32>}, {pipeline_mode = #tpu.pipeline_mode<synchronous>, transform_indices = @transform_1, window_bounds = array<i64: 1, 32>}, {pipeline_mode = #tpu.pipeline_mode<synchronous>, transform_indices = @transform_2, window_bounds = array<i64: 1, 32>}, {pipeline_mode = #tpu.pipeline_mode<synchronous>, transform_indices = @transform_3, window_bounds = array<i64: 32, 96>}, {pipeline_mode = #tpu.pipeline_mode<synchronous>, transform_indices = @transform_4, window_bounds = array<i64: 1, 96>}, {transform_indices = @transform_5, window_bounds = array<i64: 34, 96>}]} {
    %c0 = arith.constant 0 : index
    %c0_0 = arith.constant 0 : index
    %0 = vector.load %arg1[%c0, %c0_0] : memref<34x32xbf16, #tpu.memory_space<vmem>>, vector<34x32xbf16>
    %1 = arith.extf %0 : vector<34x32xbf16> to vector<34x32xf32>
    %cst = arith.constant dense<0.000000e+00> : vector<34xf32>
    %2 = vector.multi_reduction <add>, %1, %cst [1] : vector<34x32xf32> to vector<34xf32>
    %3 = vector.shape_cast %2 : vector<34xf32> to vector<34x1xf32>
    %cst_1 = arith.constant 3.200000e+01 : f32
    %4 = vector.broadcast %cst_1 : f32 to vector<34x1xf32>
    %5 = arith.divf %3, %4 : vector<34x1xf32>
    %6 = vector.broadcast %5 : vector<34x1xf32> to vector<34x32xf32>
    %7 = arith.subf %1, %6 : vector<34x32xf32>
    %8 = arith.mulf %7, %7 : vector<34x32xf32>
    %cst_2 = arith.constant dense<0.000000e+00> : vector<34xf32>
    %9 = vector.multi_reduction <add>, %8, %cst_2 [1] : vector<34x32xf32> to vector<34xf32>
    %10 = vector.shape_cast %9 : vector<34xf32> to vector<34x1xf32>
    %cst_3 = arith.constant 3.200000e+01 : f32
    %11 = vector.broadcast %cst_3 : f32 to vector<34x1xf32>
    %12 = arith.divf %10, %11 : vector<34x1xf32>
    %13 = vector.broadcast %5 : vector<34x1xf32> to vector<34x32xf32>
    %14 = arith.subf %1, %13 : vector<34x32xf32>
    %cst_4 = arith.constant 9.99999974E-6 : f32
    %15 = vector.broadcast %cst_4 : f32 to vector<34x1xf32>
    %16 = arith.addf %12, %15 : vector<34x1xf32>
    %17 = math.rsqrt %16 : vector<34x1xf32>
    %18 = vector.broadcast %17 : vector<34x1xf32> to vector<34x32xf32>
    %19 = arith.mulf %14, %18 : vector<34x32xf32>
    %c0_5 = arith.constant 0 : index
    %c0_6 = arith.constant 0 : index
    %20 = vector.load %arg2[%c0_5, %c0_6] : memref<1x32xf32, #tpu.memory_space<vmem>>, vector<1x32xf32>
    %21 = vector.broadcast %20 : vector<1x32xf32> to vector<34x32xf32>
    %22 = arith.mulf %19, %21 : vector<34x32xf32>
    %c0_7 = arith.constant 0 : index
    %c0_8 = arith.constant 0 : index
    %23 = vector.load %arg3[%c0_7, %c0_8] : memref<1x32xf32, #tpu.memory_space<vmem>>, vector<1x32xf32>
    %24 = vector.broadcast %23 : vector<1x32xf32> to vector<34x32xf32>
    %25 = arith.addf %22, %24 : vector<34x32xf32>
    %26 = arith.truncf %25 : vector<34x32xf32> to vector<34x32xbf16>
    %c0_9 = arith.constant 0 : index
    %c0_10 = arith.constant 0 : index
    %27 = vector.load %arg4[%c0_9, %c0_10] : memref<32x96xbf16, #tpu.memory_space<vmem>>, vector<32x96xbf16>
    %cst_11 = arith.constant dense<0.000000e+00> : vector<34x96xf32>
    %28 = tpu.matmul %26, %27, %cst_11 {dimension_numbers = #tpu.dot_dimension_numbers<[1], [0], [0], [1], [0, 0, 1, 1], [], []>} : vector<34x32xbf16>, vector<32x96xbf16>, vector<34x96xf32> -> vector<34x96xf32>
    %c0_12 = arith.constant 0 : index
    %c0_13 = arith.constant 0 : index
    %29 = vector.load %arg5[%c0_12, %c0_13] : memref<1x96xf32, #tpu.memory_space<vmem>>, vector<1x96xf32>
    %30 = vector.broadcast %29 : vector<1x96xf32> to vector<34x96xf32>
    %31 = arith.addf %28, %30 : vector<34x96xf32>
    %32 = arith.truncf %31 : vector<34x96xf32> to vector<34x96xbf16>
    %c0_14 = arith.constant 0 : index
    %c0_15 = arith.constant 0 : index
    %33 = vector.load %arg6[%c0_14, %c0_15] : memref<34x96xbf16, #tpu.memory_space<vmem>>, vector<34x96xbf16>
    tpu.vector_store %arg6[%c0_14, %c0_15], %32 {strides = array<i32>} : memref<34x96xbf16, #tpu.memory_space<vmem>>, vector<34x96xbf16>,
    return
  }
  func.func @transform_0(%arg0: i32) -> (i32, i32) {
    %c0_i32 = arith.constant 0 : i32
    %c0_i32_0 = arith.constant 0 : i32
    return %arg0, %c0_i32 : i32, i32
  }
  func.func @transform_1(%arg0: i32) -> (i32, i32) {
    %c0_i32 = arith.constant 0 : i32
    %c0_i32_0 = arith.constant 0 : i32
    %c0_i32_1 = arith.constant 0 : i32
    return %c0_i32, %c0_i32_0 : i32, i32
  }
  func.func @transform_2(%arg0: i32) -> (i32, i32) {
    %c0_i32 = arith.constant 0 : i32
    %c0_i32_0 = arith.constant 0 : i32
    %c0_i32_1 = arith.constant 0 : i32
    return %c0_i32, %c0_i32_0 : i32, i32
  }
  func.func @transform_3(%arg0: i32) -> (i32, i32) {
    %c0_i32 = arith.constant 0 : i32
    %c0_i32_0 = arith.constant 0 : i32
    %c0_i32_1 = arith.constant 0 : i32
    return %c0_i32, %c0_i32_0 : i32, i32
  }
  func.func @transform_4(%arg0: i32) -> (i32, i32) {
    %c0_i32 = arith.constant 0 : i32
    %c0_i32_0 = arith.constant 0 : i32
    %c0_i32_1 = arith.constant 0 : i32
    return %c0_i32, %c0_i32_0 : i32, i32
  }
  func.func @transform_5(%arg0: i32) -> (i32, i32) {
    %c0_i32 = arith.constant 0 : i32
    %c0_i32_0 = arith.constant 0 : i32
    return %arg0, %c0_i32 : i32, i32
  }
}

module attributes {stable_mosaic.version = 11 : i64} {
  func.func @_matmul_kernel(%arg0: i32, %arg1: i32, %arg2: i32, %arg3: memref<32x48xbf16, #tpu.memory_space<vmem>>, %arg4: memref<48x32xbf16, #tpu.memory_space<vmem>>, %arg5: memref<1x32xf32, #tpu.memory_space<vmem>>, %arg6: memref<32x32xbf16, #tpu.memory_space<vmem>>, %arg7: memref<32x32xf32, #tpu.memory_space<vmem>>) attributes {dimension_semantics = [#tpu.dimension_semantics<parallel>, #tpu.dimension_semantics<parallel>, #tpu.dimension_semantics<arbitrary>], iteration_bounds = array<i64: 1, 1, 1>, scalar_prefetch = 0 : i64, scratch_operands = 1 : i64, tpu.core_type = #tpu.core_type<tc>, window_params = [{transform_indices = @transform_0, window_bounds = array<i64: 32, 48>}, {transform_indices = @transform_1, window_bounds = array<i64: 48, 32>}, {transform_indices = @transform_2, window_bounds = array<i64: 1, 32>}, {transform_indices = @transform_3, window_bounds = array<i64: 32, 32>}]} {
    %c0_i32 = arith.constant 0 : i32
    %0 = arith.cmpi eq, %arg2, %c0_i32 : i32
    %1 = arith.extui %0 : i1 to i32
    %c0_i32_0 = arith.constant 0 : i32
    %2 = arith.cmpi ne, %1, %c0_i32_0 : i32
    scf.if %2 {
      %cst_10 = arith.constant 0.000000e+00 : f32
      %12 = vector.broadcast %cst_10 : f32 to vector<32x32xf32>
      %c0_11 = arith.constant 0 : index
      %c0_12 = arith.constant 0 : index
      %13 = vector.load %arg7[%c0_11, %c0_12] : memref<32x32xf32, #tpu.memory_space<vmem>>, vector<32x32xf32>
      tpu.vector_store %arg7[%c0_11, %c0_12], %12 {strides = array<i32>} : memref<32x32xf32, #tpu.memory_space<vmem>>, vector<32x32xf32>,
    } else {
    }
    %c0 = arith.constant 0 : index
    %c0_1 = arith.constant 0 : index
    %3 = vector.load %arg7[%c0, %c0_1] : memref<32x32xf32, #tpu.memory_space<vmem>>, vector<32x32xf32>
    %c0_2 = arith.constant 0 : index
    %c0_3 = arith.constant 0 : index
    %4 = vector.load %arg3[%c0_2, %c0_3] : memref<32x48xbf16, #tpu.memory_space<vmem>>, vector<32x48xbf16>
    %c0_4 = arith.constant 0 : index
    %c0_5 = arith.constant 0 : index
    %5 = vector.load %arg4[%c0_4, %c0_5] : memref<48x32xbf16, #tpu.memory_space<vmem>>, vector<48x32xbf16>
    %cst = arith.constant dense<0.000000e+00> : vector<32x32xf32>
    %6 = tpu.matmul %4, %5, %cst {dimension_numbers = #tpu.dot_dimension_numbers<[1], [0], [0], [1], [0, 0, 1, 1], [], []>} : vector<32x48xbf16>, vector<48x32xbf16>, vector<32x32xf32> -> vector<32x32xf32>
    %7 = arith.addf %3, %6 : vector<32x32xf32>
    %c0_6 = arith.constant 0 : index
    %c0_7 = arith.constant 0 : index
    %8 = vector.load %arg7[%c0_6, %c0_7] : memref<32x32xf32, #tpu.memory_space<vmem>>, vector<32x32xf32>
    tpu.vector_store %arg7[%c0_6, %c0_7], %7 {strides = array<i32>} : memref<32x32xf32, #tpu.memory_space<vmem>>, vector<32x32xf32>,
    %c0_i32_8 = arith.constant 0 : i32
    %9 = arith.cmpi eq, %arg2, %c0_i32_8 : i32
    %10 = arith.extui %9 : i1 to i32
    %c0_i32_9 = arith.constant 0 : i32
    %11 = arith.cmpi ne, %10, %c0_i32_9 : i32
    scf.if %11 {
      %c0_10 = arith.constant 0 : index
      %c0_11 = arith.constant 0 : index
      %12 = vector.load %arg7[%c0_10, %c0_11] : memref<32x32xf32, #tpu.memory_space<vmem>>, vector<32x32xf32>
      %c0_12 = arith.constant 0 : index
      %c0_13 = arith.constant 0 : index
      %13 = vector.load %arg5[%c0_12, %c0_13] : memref<1x32xf32, #tpu.memory_space<vmem>>, vector<1x32xf32>
      %14 = vector.broadcast %13 : vector<1x32xf32> to vector<32x32xf32>
      %15 = arith.addf %12, %14 : vector<32x32xf32>
      %16 = arith.truncf %15 : vector<32x32xf32> to vector<32x32xbf16>
      %c0_14 = arith.constant 0 : index
      %c0_15 = arith.constant 0 : index
      %17 = vector.load %arg6[%c0_14, %c0_15] : memref<32x32xbf16, #tpu.memory_space<vmem>>, vector<32x32xbf16>
      tpu.vector_store %arg6[%c0_14, %c0_15], %16 {strides = array<i32>} : memref<32x32xbf16, #tpu.memory_space<vmem>>, vector<32x32xbf16>,
    } else {
    }
    return
  }
  func.func @transform_0(%arg0: i32, %arg1: i32, %arg2: i32) -> (i32, i32) {
    %c0_i32 = arith.constant 0 : i32
    return %arg0, %arg2 : i32, i32
  }
  func.func @transform_1(%arg0: i32, %arg1: i32, %arg2: i32) -> (i32, i32) {
    %c0_i32 = arith.constant 0 : i32
    return %arg2, %arg1 : i32, i32
  }
  func.func @transform_2(%arg0: i32, %arg1: i32, %arg2: i32) -> (i32, i32) {
    %c0_i32 = arith.constant 0 : i32
    %c0_i32_0 = arith.constant 0 : i32
    return %c0_i32, %arg1 : i32, i32
  }
  func.func @transform_3(%arg0: i32, %arg1: i32, %arg2: i32) -> (i32, i32) {
    %c0_i32 = arith.constant 0 : i32
    return %arg0, %arg1 : i32, i32
  }
}

module attributes {stable_mosaic.version = 11 : i64} {
  func.func @_attn_out_kernel(%arg0: i32, %arg1: memref<1x17x96xbf16, #tpu.memory_space<vmem>>, %arg2: memref<1x17x32xbf16, #tpu.memory_space<vmem>>, %arg3: memref<32x32xbf16, #tpu.memory_space<vmem>>, %arg4: memref<1x32xf32, #tpu.memory_space<vmem>>, %arg5: memref<1x17x32xbf16, #tpu.memory_space<vmem>>) attributes {dimension_semantics = [#tpu.dimension_semantics<parallel>], iteration_bounds = array<i64: 2>, scalar_prefetch = 0 : i64, scratch_operands = 0 : i64, tpu.core_type = #tpu.core_type<tc>, window_params = [{transform_indices = @transform_0, window_bounds = array<i64: 1, 17, 96>}, {transform_indices = @transform_1, window_bounds = array<i64: 1, 17, 32>}, {pipeline_mode = #tpu.pipeline_mode<synchronous>, transform_indices = @transform_2, window_bounds = array<i64: 32, 32>}, {pipeline_mode = #tpu.pipeline_mode<synchronous>, transform_indices = @transform_3, window_bounds = array<i64: 1, 32>}, {transform_indices = @transform_4, window_bounds = array<i64: 1, 17, 32>}]} {
    %c0 = arith.constant 0 : index
    %c0_0 = arith.constant 0 : index
    %c0_1 = arith.constant 0 : index
    %0 = vector.load %arg1[%c0, %c0_0, %c0_1] : memref<1x17x96xbf16, #tpu.memory_space<vmem>>, vector<1x17x96xbf16>
    %1 = vector.shape_cast %0 : vector<1x17x96xbf16> to vector<17x96xbf16>
    %c0_2 = arith.constant 0 : index
    %c0_3 = arith.constant 0 : index
    %2 = vector.load %arg3[%c0_2, %c0_3] : memref<32x32xbf16, #tpu.memory_space<vmem>>, vector<32x32xbf16>
    %3 = vector.extract_strided_slice %1 {offsets = [0, 0], sizes = [17, 32], strides = [1, 1]} : vector<17x96xbf16> to vector<17x32xbf16>
    %4 = vector.extract_strided_slice %1 {offsets = [0, 32], sizes = [17, 32], strides = [1, 1]} : vector<17x96xbf16> to vector<17x32xbf16>
    %5 = vector.extract_strided_slice %1 {offsets = [0, 64], sizes = [17, 32], strides = [1, 1]} : vector<17x96xbf16> to vector<17x32xbf16>
    %cst = arith.constant 0.000000e+00 : f32
    %6 = vector.broadcast %cst : f32 to vector<17x32xf32>
    %7 = vector.extract_strided_slice %3 {offsets = [0, 0], sizes = [17, 16], strides = [1, 1]} : vector<17x32xbf16> to vector<17x16xbf16>
    %8 = vector.extract_strided_slice %4 {offsets = [0, 0], sizes = [17, 16], strides = [1, 1]} : vector<17x32xbf16> to vector<17x16xbf16>
    %9 = vector.extract_strided_slice %5 {offsets = [0, 0], sizes = [17, 16], strides = [1, 1]} : vector<17x32xbf16> to vector<17x16xbf16>
    %cst_4 = arith.constant dense<0.000000e+00> : vector<17x17xf32>
    %10 = tpu.matmul %7, %8, %cst_4 {dimension_numbers = #tpu.dot_dimension_numbers<[1], [1], [0], [0], [0, 0, 1, 0], [], []>} : vector<17x16xbf16>, vector<17x16xbf16>, vector<17x17xf32> -> vector<17x17xf32>
    %cst_5 = arith.constant 2.500000e-01 : f32
    %11 = vector.broadcast %cst_5 : f32 to vector<17x17xf32>
    %12 = arith.mulf %10, %11 : vector<17x17xf32>
    %cst_6 = arith.constant dense<0xFF800000> : vector<17xf32>
    %13 = vector.multi_reduction <maximumf>, %12, %cst_6 [1] : vector<17x17xf32> to vector<17xf32>
    %14 = vector.shape_cast %13 : vector<17xf32> to vector<17x1xf32>
    %15 = vector.broadcast %14 : vector<17x1xf32> to vector<17x17xf32>
    %16 = arith.subf %12, %15 : vector<17x17xf32>
    %17 = math.exp %16 : vector<17x17xf32>
    %cst_7 = arith.constant dense<0.000000e+00> : vector<17xf32>
    %18 = vector.multi_reduction <add>, %17, %cst_7 [1] : vector<17x17xf32> to vector<17xf32>
    %19 = vector.shape_cast %18 : vector<17xf32> to vector<17x1xf32>
    %20 = tpu.reciprocal %19 {approx = true} : vector<17x1xf32> -> vector<17x1xf32>
    %21 = vector.broadcast %20 : vector<17x1xf32> to vector<17x17xf32>
    %22 = arith.mulf %17, %21 : vector<17x17xf32>
    %23 = arith.truncf %22 : vector<17x17xf32> to vector<17x17xbf16>
    %cst_8 = arith.constant dense<0.000000e+00> : vector<17x16xf32>
    %24 = tpu.matmul %23, %9, %cst_8 {dimension_numbers = #tpu.dot_dimension_numbers<[1], [0], [0], [1], [0, 0, 1, 1], [], []>} : vector<17x17xbf16>, vector<17x16xbf16>, vector<17x16xf32> -> vector<17x16xf32>
    %25 = arith.truncf %24 : vector<17x16xf32> to vector<17x16xbf16>
    %26 = vector.extract_strided_slice %2 {offsets = [0, 0], sizes = [16, 32], strides = [1, 1]} : vector<32x32xbf16> to vector<16x32xbf16>
    %cst_9 = arith.constant dense<0.000000e+00> : vector<17x32xf32>
    %27 = tpu.matmul %25, %26, %cst_9 {dimension_numbers = #tpu.dot_dimension_numbers<[1], [0], [0], [1], [0, 0, 1, 1], [], []>} : vector<17x16xbf16>, vector<16x32xbf16>, vector<17x32xf32> -> vector<17x32xf32>
    %28 = arith.addf %6, %27 : vector<17x32xf32>
    %29 = vector.extract_strided_slice %3 {offsets = [0, 16], sizes = [17, 16], strides = [1, 1]} : vector<17x32xbf16> to vector<17x16xbf16>
    %30 = vector.extract_strided_slice %4 {offsets = [0, 16], sizes = [17, 16], strides = [1, 1]} : vector<17x32xbf16> to vector<17x16xbf16>
    %31 = vector.extract_strided_slice %5 {offsets = [0, 16], sizes = [17, 16], strides = [1, 1]} : vector<17x32xbf16> to vector<17x16xbf16>
    %cst_10 = arith.constant dense<0.000000e+00> : vector<17x17xf32>
    %32 = tpu.matmul %29, %30, %cst_10 {dimension_numbers = #tpu.dot_dimension_numbers<[1], [1], [0], [0], [0, 0, 1, 0], [], []>} : vector<17x16xbf16>, vector<17x16xbf16>, vector<17x17xf32> -> vector<17x17xf32>
    %cst_11 = arith.constant 2.500000e-01 : f32
    %33 = vector.broadcast %cst_11 : f32 to vector<17x17xf32>
    %34 = arith.mulf %32, %33 : vector<17x17xf32>
    %cst_12 = arith.constant dense<0xFF800000> : vector<17xf32>
    %35 = vector.multi_reduction <maximumf>, %34, %cst_12 [1] : vector<17x17xf32> to vector<17xf32>
    %36 = vector.shape_cast %35 : vector<17xf32> to vector<17x1xf32>
    %37 = vector.broadcast %36 : vector<17x1xf32> to vector<17x17xf32>
    %38 = arith.subf %34, %37 : vector<17x17xf32>
    %39 = math.exp %38 : vector<17x17xf32>
    %cst_13 = arith.constant dense<0.000000e+00> : vector<17xf32>
    %40 = vector.multi_reduction <add>, %39, %cst_13 [1] : vector<17x17xf32> to vector<17xf32>
    %41 = vector.shape_cast %40 : vector<17xf32> to vector<17x1xf32>
    %42 = tpu.reciprocal %41 {approx = true} : vector<17x1xf32> -> vector<17x1xf32>
    %43 = vector.broadcast %42 : vector<17x1xf32> to vector<17x17xf32>
    %44 = arith.mulf %39, %43 : vector<17x17xf32>
    %45 = arith.truncf %44 : vector<17x17xf32> to vector<17x17xbf16>
    %cst_14 = arith.constant dense<0.000000e+00> : vector<17x16xf32>
    %46 = tpu.matmul %45, %31, %cst_14 {dimension_numbers = #tpu.dot_dimension_numbers<[1], [0], [0], [1], [0, 0, 1, 1], [], []>} : vector<17x17xbf16>, vector<17x16xbf16>, vector<17x16xf32> -> vector<17x16xf32>
    %47 = arith.truncf %46 : vector<17x16xf32> to vector<17x16xbf16>
    %48 = vector.extract_strided_slice %2 {offsets = [16, 0], sizes = [16, 32], strides = [1, 1]} : vector<32x32xbf16> to vector<16x32xbf16>
    %cst_15 = arith.constant dense<0.000000e+00> : vector<17x32xf32>
    %49 = tpu.matmul %47, %48, %cst_15 {dimension_numbers = #tpu.dot_dimension_numbers<[1], [0], [0], [1], [0, 0, 1, 1], [], []>} : vector<17x16xbf16>, vector<16x32xbf16>, vector<17x32xf32> -> vector<17x32xf32>
    %50 = arith.addf %28, %49 : vector<17x32xf32>
    %c0_16 = arith.constant 0 : index
    %c0_17 = arith.constant 0 : index
    %51 = vector.load %arg4[%c0_16, %c0_17] : memref<1x32xf32, #tpu.memory_space<vmem>>, vector<1x32xf32>
    %52 = vector.broadcast %51 : vector<1x32xf32> to vector<17x32xf32>
    %53 = arith.addf %50, %52 : vector<17x32xf32>
    %c0_18 = arith.constant 0 : index
    %c0_19 = arith.constant 0 : index
    %c0_20 = arith.constant 0 : index
    %54 = vector.load %arg2[%c0_18, %c0_19, %c0_20] : memref<1x17x32xbf16, #tpu.memory_space<vmem>>, vector<1x17x32xbf16>
    %55 = vector.shape_cast %54 : vector<1x17x32xbf16> to vector<17x32xbf16>
    %56 = arith.extf %55 : vector<17x32xbf16> to vector<17x32xf32>
    %57 = arith.addf %53, %56 : vector<17x32xf32>
    %58 = arith.truncf %57 : vector<17x32xf32> to vector<17x32xbf16>
    %c0_21 = arith.constant 0 : index
    %c0_22 = arith.constant 0 : index
    %c0_23 = arith.constant 0 : index
    %59 = vector.load %arg5[%c0_21, %c0_22, %c0_23] : memref<1x17x32xbf16, #tpu.memory_space<vmem>>, vector<1x17x32xbf16>
    %60 = vector.shape_cast %59 : vector<1x17x32xbf16> to vector<17x32xbf16>
    %61 = vector.shape_cast %58 : vector<17x32xbf16> to vector<1x17x32xbf16>
    tpu.vector_store %arg5[%c0_21, %c0_22, %c0_23], %61 {strides = array<i32>} : memref<1x17x32xbf16, #tpu.memory_space<vmem>>, vector<1x17x32xbf16>,
    return
  }
  func.func @transform_0(%arg0: i32) -> (i32, i32, i32) {
    %c0_i32 = arith.constant 0 : i32
    %c0_i32_0 = arith.constant 0 : i32
    %c0_i32_1 = arith.constant 0 : i32
    return %arg0, %c0_i32, %c0_i32_0 : i32, i32, i32
  }
  func.func @transform_1(%arg0: i32) -> (i32, i32, i32) {
    %c0_i32 = arith.constant 0 : i32
    %c0_i32_0 = arith.constant 0 : i32
    %c0_i32_1 = arith.constant 0 : i32
    return %arg0, %c0_i32, %c0_i32_0 : i32, i32, i32
  }
  func.func @transform_2(%arg0: i32) -> (i32, i32) {
    %c0_i32 = arith.constant 0 : i32
    %c0_i32_0 = arith.constant 0 : i32
    %c0_i32_1 = arith.constant 0 : i32
    return %c0_i32, %c0_i32_0 : i32, i32
  }
  func.func @transform_3(%arg0: i32) -> (i32, i32) {
    %c0_i32 = arith.constant 0 : i32
    %c0_i32_0 = arith.constant 0 : i32
    %c0_i32_1 = arith.constant 0 : i32
    return %c0_i32, %c0_i32_0 : i32, i32
  }
  func.func @transform_4(%arg0: i32) -> (i32, i32, i32) {
    %c0_i32 = arith.constant 0 : i32
    %c0_i32_0 = arith.constant 0 : i32
    %c0_i32_1 = arith.constant 0 : i32
    return %arg0, %c0_i32, %c0_i32_0 : i32, i32, i32
  }
}

module attributes {stable_mosaic.version = 11 : i64} {
  func.func @_ln_matmul_kernel(%arg0: i32, %arg1: memref<32x32xbf16, #tpu.memory_space<vmem>>, %arg2: memref<1x32xf32, #tpu.memory_space<vmem>>, %arg3: memref<1x32xf32, #tpu.memory_space<vmem>>, %arg4: memref<32x64xbf16, #tpu.memory_space<vmem>>, %arg5: memref<1x64xf32, #tpu.memory_space<vmem>>, %arg6: memref<32x64xbf16, #tpu.memory_space<vmem>>) attributes {dimension_semantics = [#tpu.dimension_semantics<parallel>], iteration_bounds = array<i64: 1>, scalar_prefetch = 0 : i64, scratch_operands = 0 : i64, tpu.core_type = #tpu.core_type<tc>, window_params = [{transform_indices = @transform_0, window_bounds = array<i64: 32, 32>}, {pipeline_mode = #tpu.pipeline_mode<synchronous>, transform_indices = @transform_1, window_bounds = array<i64: 1, 32>}, {pipeline_mode = #tpu.pipeline_mode<synchronous>, transform_indices = @transform_2, window_bounds = array<i64: 1, 32>}, {pipeline_mode = #tpu.pipeline_mode<synchronous>, transform_indices = @transform_3, window_bounds = array<i64: 32, 64>}, {pipeline_mode = #tpu.pipeline_mode<synchronous>, transform_indices = @transform_4, window_bounds = array<i64: 1, 64>}, {transform_indices = @transform_5, window_bounds = array<i64: 32, 64>}]} {
    %c0 = arith.constant 0 : index
    %c0_0 = arith.constant 0 : index
    %0 = vector.load %arg1[%c0, %c0_0] : memref<32x32xbf16, #tpu.memory_space<vmem>>, vector<32x32xbf16>
    %1 = arith.extf %0 : vector<32x32xbf16> to vector<32x32xf32>
    %cst = arith.constant dense<0.000000e+00> : vector<32xf32>
    %2 = vector.multi_reduction <add>, %1, %cst [1] : vector<32x32xf32> to vector<32xf32>
    %3 = vector.shape_cast %2 : vector<32xf32> to vector<32x1xf32>
    %cst_1 = arith.constant 3.200000e+01 : f32
    %4 = vector.broadcast %cst_1 : f32 to vector<32x1xf32>
    %5 = arith.divf %3, %4 : vector<32x1xf32>
    %6 = vector.broadcast %5 : vector<32x1xf32> to vector<32x32xf32>
    %7 = arith.subf %1, %6 : vector<32x32xf32>
    %8 = arith.mulf %7, %7 : vector<32x32xf32>
    %cst_2 = arith.constant dense<0.000000e+00> : vector<32xf32>
    %9 = vector.multi_reduction <add>, %8, %cst_2 [1] : vector<32x32xf32> to vector<32xf32>
    %10 = vector.shape_cast %9 : vector<32xf32> to vector<32x1xf32>
    %cst_3 = arith.constant 3.200000e+01 : f32
    %11 = vector.broadcast %cst_3 : f32 to vector<32x1xf32>
    %12 = arith.divf %10, %11 : vector<32x1xf32>
    %13 = vector.broadcast %5 : vector<32x1xf32> to vector<32x32xf32>
    %14 = arith.subf %1, %13 : vector<32x32xf32>
    %cst_4 = arith.constant 9.99999974E-6 : f32
    %15 = vector.broadcast %cst_4 : f32 to vector<32x1xf32>
    %16 = arith.addf %12, %15 : vector<32x1xf32>
    %17 = math.rsqrt %16 : vector<32x1xf32>
    %18 = vector.broadcast %17 : vector<32x1xf32> to vector<32x32xf32>
    %19 = arith.mulf %14, %18 : vector<32x32xf32>
    %c0_5 = arith.constant 0 : index
    %c0_6 = arith.constant 0 : index
    %20 = vector.load %arg2[%c0_5, %c0_6] : memref<1x32xf32, #tpu.memory_space<vmem>>, vector<1x32xf32>
    %21 = vector.broadcast %20 : vector<1x32xf32> to vector<32x32xf32>
    %22 = arith.mulf %19, %21 : vector<32x32xf32>
    %c0_7 = arith.constant 0 : index
    %c0_8 = arith.constant 0 : index
    %23 = vector.load %arg3[%c0_7, %c0_8] : memref<1x32xf32, #tpu.memory_space<vmem>>, vector<1x32xf32>
    %24 = vector.broadcast %23 : vector<1x32xf32> to vector<32x32xf32>
    %25 = arith.addf %22, %24 : vector<32x32xf32>
    %26 = arith.truncf %25 : vector<32x32xf32> to vector<32x32xbf16>
    %c0_9 = arith.constant 0 : index
    %c0_10 = arith.constant 0 : index
    %27 = vector.load %arg4[%c0_9, %c0_10] : memref<32x64xbf16, #tpu.memory_space<vmem>>, vector<32x64xbf16>
    %cst_11 = arith.constant dense<0.000000e+00> : vector<32x64xf32>
    %28 = tpu.matmul %26, %27, %cst_11 {dimension_numbers = #tpu.dot_dimension_numbers<[1], [0], [0], [1], [0, 0, 1, 1], [], []>} : vector<32x32xbf16>, vector<32x64xbf16>, vector<32x64xf32> -> vector<32x64xf32>
    %c0_12 = arith.constant 0 : index
    %c0_13 = arith.constant 0 : index
    %29 = vector.load %arg5[%c0_12, %c0_13] : memref<1x64xf32, #tpu.memory_space<vmem>>, vector<1x64xf32>
    %30 = vector.broadcast %29 : vector<1x64xf32> to vector<32x64xf32>
    %31 = arith.addf %28, %30 : vector<32x64xf32>
    %cst_14 = arith.constant 3.000000e+00 : f32
    %32 = vector.broadcast %cst_14 : f32 to vector<32x64xf32>
    %33 = arith.addf %31, %32 : vector<32x64xf32>
    %cst_15 = arith.constant 0.000000e+00 : f32
    %cst_16 = arith.constant 6.000000e+00 : f32
    %34 = vector.broadcast %cst_15 : f32 to vector<32x64xf32>
    %35 = arith.maximumf %34, %33 : vector<32x64xf32>
    %36 = vector.broadcast %cst_16 : f32 to vector<32x64xf32>
    %37 = arith.minimumf %36, %35 : vector<32x64xf32>
    %38 = arith.mulf %31, %37 : vector<32x64xf32>
    %cst_17 = arith.constant 0.166666672 : f32
    %39 = vector.broadcast %cst_17 : f32 to vector<32x64xf32>
    %40 = arith.mulf %38, %39 : vector<32x64xf32>
    %41 = arith.truncf %40 : vector<32x64xf32> to vector<32x64xbf16>
    %c0_18 = arith.constant 0 : index
    %c0_19 = arith.constant 0 : index
    %42 = vector.load %arg6[%c0_18, %c0_19] : memref<32x64xbf16, #tpu.memory_space<vmem>>, vector<32x64xbf16>
    tpu.vector_store %arg6[%c0_18, %c0_19], %41 {strides = array<i32>} : memref<32x64xbf16, #tpu.memory_space<vmem>>, vector<32x64xbf16>,
    return
  }
  func.func @transform_0(%arg0: i32) -> (i32, i32) {
    %c0_i32 = arith.constant 0 : i32
    %c0_i32_0 = arith.constant 0 : i32
    return %arg0, %c0_i32 : i32, i32
  }
  func.func @transform_1(%arg0: i32) -> (i32, i32) {
    %c0_i32 = arith.constant 0 : i32
    %c0_i32_0 = arith.constant 0 : i32
    %c0_i32_1 = arith.constant 0 : i32
    return %c0_i32, %c0_i32_0 : i32, i32
  }
  func.func @transform_2(%arg0: i32) -> (i32, i32) {
    %c0_i32 = arith.constant 0 : i32
    %c0_i32_0 = arith.constant 0 : i32
    %c0_i32_1 = arith.constant 0 : i32
    return %c0_i32, %c0_i32_0 : i32, i32
  }
  func.func @transform_3(%arg0: i32) -> (i32, i32) {
    %c0_i32 = arith.constant 0 : i32
    %c0_i32_0 = arith.constant 0 : i32
    %c0_i32_1 = arith.constant 0 : i32
    return %c0_i32, %c0_i32_0 : i32, i32
  }
  func.func @transform_4(%arg0: i32) -> (i32, i32) {
    %c0_i32 = arith.constant 0 : i32
    %c0_i32_0 = arith.constant 0 : i32
    %c0_i32_1 = arith.constant 0 : i32
    return %c0_i32, %c0_i32_0 : i32, i32
  }
  func.func @transform_5(%arg0: i32) -> (i32, i32) {
    %c0_i32 = arith.constant 0 : i32
    %c0_i32_0 = arith.constant 0 : i32
    return %arg0, %c0_i32 : i32, i32
  }
}

module attributes {stable_mosaic.version = 11 : i64} {
  func.func @_dwconv3x3_kernel(%arg0: i32, %arg1: memref<1x6x6x64xbf16, #tpu.memory_space<vmem>>, %arg2: memref<3x3x64xbf16, #tpu.memory_space<vmem>>, %arg3: memref<1x4x4x64xbf16, #tpu.memory_space<vmem>>) attributes {dimension_semantics = [#tpu.dimension_semantics<parallel>], iteration_bounds = array<i64: 2>, scalar_prefetch = 0 : i64, scratch_operands = 0 : i64, tpu.core_type = #tpu.core_type<tc>, window_params = [{transform_indices = @transform_0, window_bounds = array<i64: 1, 6, 6, 64>}, {pipeline_mode = #tpu.pipeline_mode<synchronous>, transform_indices = @transform_1, window_bounds = array<i64: 3, 3, 64>}, {transform_indices = @transform_2, window_bounds = array<i64: 1, 4, 4, 64>}]} {
    %c0 = arith.constant 0 : index
    %c0_0 = arith.constant 0 : index
    %c0_1 = arith.constant 0 : index
    %c0_2 = arith.constant 0 : index
    %0 = vector.load %arg1[%c0, %c0_0, %c0_1, %c0_2] : memref<1x6x6x64xbf16, #tpu.memory_space<vmem>>, vector<1x6x6x64xbf16>
    %1 = vector.shape_cast %0 : vector<1x6x6x64xbf16> to vector<6x6x64xbf16>
    %2 = arith.extf %1 : vector<6x6x64xbf16> to vector<6x6x64xf32>
    %c0_3 = arith.constant 0 : index
    %c0_4 = arith.constant 0 : index
    %c0_5 = arith.constant 0 : index
    %3 = vector.load %arg2[%c0_3, %c0_4, %c0_5] : memref<3x3x64xbf16, #tpu.memory_space<vmem>>, vector<3x3x64xbf16>
    %4 = arith.extf %3 : vector<3x3x64xbf16> to vector<3x3x64xf32>
    %5 = vector.extract_strided_slice %2 {offsets = [0, 0, 0], sizes = [4, 4, 64], strides = [1, 1, 1]} : vector<6x6x64xf32> to vector<4x4x64xf32>
    %6 = vector.extract_strided_slice %4 {offsets = [0, 0, 0], sizes = [1, 1, 64], strides = [1, 1, 1]} : vector<3x3x64xf32> to vector<1x1x64xf32>
    %7 = vector.shape_cast %6 : vector<1x1x64xf32> to vector<64xf32>
    %8 = vector.shape_cast %7 : vector<64xf32> to vector<1x1x64xf32>
    %9 = vector.broadcast %8 : vector<1x1x64xf32> to vector<4x4x64xf32>
    %10 = arith.mulf %5, %9 : vector<4x4x64xf32>
    %11 = vector.extract_strided_slice %2 {offsets = [0, 1, 0], sizes = [4, 4, 64], strides = [1, 1, 1]} : vector<6x6x64xf32> to vector<4x4x64xf32>
    %12 = vector.extract_strided_slice %4 {offsets = [0, 1, 0], sizes = [1, 1, 64], strides = [1, 1, 1]} : vector<3x3x64xf32> to vector<1x1x64xf32>
    %13 = vector.shape_cast %12 : vector<1x1x64xf32> to vector<64xf32>
    %14 = vector.shape_cast %13 : vector<64xf32> to vector<1x1x64xf32>
    %15 = vector.broadcast %14 : vector<1x1x64xf32> to vector<4x4x64xf32>
    %16 = arith.mulf %11, %15 : vector<4x4x64xf32>
    %17 = arith.addf %10, %16 : vector<4x4x64xf32>
    %18 = vector.extract_strided_slice %2 {offsets = [0, 2, 0], sizes = [4, 4, 64], strides = [1, 1, 1]} : vector<6x6x64xf32> to vector<4x4x64xf32>
    %19 = vector.extract_strided_slice %4 {offsets = [0, 2, 0], sizes = [1, 1, 64], strides = [1, 1, 1]} : vector<3x3x64xf32> to vector<1x1x64xf32>
    %20 = vector.shape_cast %19 : vector<1x1x64xf32> to vector<64xf32>
    %21 = vector.shape_cast %20 : vector<64xf32> to vector<1x1x64xf32>
    %22 = vector.broadcast %21 : vector<1x1x64xf32> to vector<4x4x64xf32>
    %23 = arith.mulf %18, %22 : vector<4x4x64xf32>
    %24 = arith.addf %17, %23 : vector<4x4x64xf32>
    %25 = vector.extract_strided_slice %2 {offsets = [1, 0, 0], sizes = [4, 4, 64], strides = [1, 1, 1]} : vector<6x6x64xf32> to vector<4x4x64xf32>
    %26 = vector.extract_strided_slice %4 {offsets = [1, 0, 0], sizes = [1, 1, 64], strides = [1, 1, 1]} : vector<3x3x64xf32> to vector<1x1x64xf32>
    %27 = vector.shape_cast %26 : vector<1x1x64xf32> to vector<64xf32>
    %28 = vector.shape_cast %27 : vector<64xf32> to vector<1x1x64xf32>
    %29 = vector.broadcast %28 : vector<1x1x64xf32> to vector<4x4x64xf32>
    %30 = arith.mulf %25, %29 : vector<4x4x64xf32>
    %31 = arith.addf %24, %30 : vector<4x4x64xf32>
    %32 = vector.extract_strided_slice %2 {offsets = [1, 1, 0], sizes = [4, 4, 64], strides = [1, 1, 1]} : vector<6x6x64xf32> to vector<4x4x64xf32>
    %33 = vector.extract_strided_slice %4 {offsets = [1, 1, 0], sizes = [1, 1, 64], strides = [1, 1, 1]} : vector<3x3x64xf32> to vector<1x1x64xf32>
    %34 = vector.shape_cast %33 : vector<1x1x64xf32> to vector<64xf32>
    %35 = vector.shape_cast %34 : vector<64xf32> to vector<1x1x64xf32>
    %36 = vector.broadcast %35 : vector<1x1x64xf32> to vector<4x4x64xf32>
    %37 = arith.mulf %32, %36 : vector<4x4x64xf32>
    %38 = arith.addf %31, %37 : vector<4x4x64xf32>
    %39 = vector.extract_strided_slice %2 {offsets = [1, 2, 0], sizes = [4, 4, 64], strides = [1, 1, 1]} : vector<6x6x64xf32> to vector<4x4x64xf32>
    %40 = vector.extract_strided_slice %4 {offsets = [1, 2, 0], sizes = [1, 1, 64], strides = [1, 1, 1]} : vector<3x3x64xf32> to vector<1x1x64xf32>
    %41 = vector.shape_cast %40 : vector<1x1x64xf32> to vector<64xf32>
    %42 = vector.shape_cast %41 : vector<64xf32> to vector<1x1x64xf32>
    %43 = vector.broadcast %42 : vector<1x1x64xf32> to vector<4x4x64xf32>
    %44 = arith.mulf %39, %43 : vector<4x4x64xf32>
    %45 = arith.addf %38, %44 : vector<4x4x64xf32>
    %46 = vector.extract_strided_slice %2 {offsets = [2, 0, 0], sizes = [4, 4, 64], strides = [1, 1, 1]} : vector<6x6x64xf32> to vector<4x4x64xf32>
    %47 = vector.extract_strided_slice %4 {offsets = [2, 0, 0], sizes = [1, 1, 64], strides = [1, 1, 1]} : vector<3x3x64xf32> to vector<1x1x64xf32>
    %48 = vector.shape_cast %47 : vector<1x1x64xf32> to vector<64xf32>
    %49 = vector.shape_cast %48 : vector<64xf32> to vector<1x1x64xf32>
    %50 = vector.broadcast %49 : vector<1x1x64xf32> to vector<4x4x64xf32>
    %51 = arith.mulf %46, %50 : vector<4x4x64xf32>
    %52 = arith.addf %45, %51 : vector<4x4x64xf32>
    %53 = vector.extract_strided_slice %2 {offsets = [2, 1, 0], sizes = [4, 4, 64], strides = [1, 1, 1]} : vector<6x6x64xf32> to vector<4x4x64xf32>
    %54 = vector.extract_strided_slice %4 {offsets = [2, 1, 0], sizes = [1, 1, 64], strides = [1, 1, 1]} : vector<3x3x64xf32> to vector<1x1x64xf32>
    %55 = vector.shape_cast %54 : vector<1x1x64xf32> to vector<64xf32>
    %56 = vector.shape_cast %55 : vector<64xf32> to vector<1x1x64xf32>
    %57 = vector.broadcast %56 : vector<1x1x64xf32> to vector<4x4x64xf32>
    %58 = arith.mulf %53, %57 : vector<4x4x64xf32>
    %59 = arith.addf %52, %58 : vector<4x4x64xf32>
    %60 = vector.extract_strided_slice %2 {offsets = [2, 2, 0], sizes = [4, 4, 64], strides = [1, 1, 1]} : vector<6x6x64xf32> to vector<4x4x64xf32>
    %61 = vector.extract_strided_slice %4 {offsets = [2, 2, 0], sizes = [1, 1, 64], strides = [1, 1, 1]} : vector<3x3x64xf32> to vector<1x1x64xf32>
    %62 = vector.shape_cast %61 : vector<1x1x64xf32> to vector<64xf32>
    %63 = vector.shape_cast %62 : vector<64xf32> to vector<1x1x64xf32>
    %64 = vector.broadcast %63 : vector<1x1x64xf32> to vector<4x4x64xf32>
    %65 = arith.mulf %60, %64 : vector<4x4x64xf32>
    %66 = arith.addf %59, %65 : vector<4x4x64xf32>
    %67 = arith.truncf %66 : vector<4x4x64xf32> to vector<4x4x64xbf16>
    %c0_6 = arith.constant 0 : index
    %c0_7 = arith.constant 0 : index
    %c0_8 = arith.constant 0 : index
    %c0_9 = arith.constant 0 : index
    %68 = vector.load %arg3[%c0_6, %c0_7, %c0_8, %c0_9] : memref<1x4x4x64xbf16, #tpu.memory_space<vmem>>, vector<1x4x4x64xbf16>
    %69 = vector.shape_cast %68 : vector<1x4x4x64xbf16> to vector<4x4x64xbf16>
    %70 = vector.shape_cast %67 : vector<4x4x64xbf16> to vector<1x4x4x64xbf16>
    tpu.vector_store %arg3[%c0_6, %c0_7, %c0_8, %c0_9], %70 {strides = array<i32>} : memref<1x4x4x64xbf16, #tpu.memory_space<vmem>>, vector<1x4x4x64xbf16>,
    return
  }
  func.func @transform_0(%arg0: i32) -> (i32, i32, i32, i32) {
    %c0_i32 = arith.constant 0 : i32
    %c0_i32_0 = arith.constant 0 : i32
    %c0_i32_1 = arith.constant 0 : i32
    %c0_i32_2 = arith.constant 0 : i32
    return %arg0, %c0_i32, %c0_i32_0, %c0_i32_1 : i32, i32, i32, i32
  }
  func.func @transform_1(%arg0: i32) -> (i32, i32, i32) {
    %c0_i32 = arith.constant 0 : i32
    %c0_i32_0 = arith.constant 0 : i32
    %c0_i32_1 = arith.constant 0 : i32
    %c0_i32_2 = arith.constant 0 : i32
    return %c0_i32, %c0_i32_0, %c0_i32_1 : i32, i32, i32
  }
  func.func @transform_2(%arg0: i32) -> (i32, i32, i32, i32) {
    %c0_i32 = arith.constant 0 : i32
    %c0_i32_0 = arith.constant 0 : i32
    %c0_i32_1 = arith.constant 0 : i32
    %c0_i32_2 = arith.constant 0 : i32
    return %arg0, %c0_i32, %c0_i32_0, %c0_i32_1 : i32, i32, i32, i32
  }
}

module attributes {stable_mosaic.version = 11 : i64} {
  func.func @_pw_down_kernel(%arg0: i32, %arg1: memref<32x64xbf16, #tpu.memory_space<vmem>>, %arg2: memref<32x32xbf16, #tpu.memory_space<vmem>>, %arg3: memref<64x64xbf16, #tpu.memory_space<vmem>>, %arg4: memref<64x32xbf16, #tpu.memory_space<vmem>>, %arg5: memref<1x32xf32, #tpu.memory_space<vmem>>, %arg6: memref<32x32xbf16, #tpu.memory_space<vmem>>) attributes {dimension_semantics = [#tpu.dimension_semantics<parallel>], iteration_bounds = array<i64: 1>, scalar_prefetch = 0 : i64, scratch_operands = 0 : i64, tpu.core_type = #tpu.core_type<tc>, window_params = [{transform_indices = @transform_0, window_bounds = array<i64: 32, 64>}, {transform_indices = @transform_1, window_bounds = array<i64: 32, 32>}, {pipeline_mode = #tpu.pipeline_mode<synchronous>, transform_indices = @transform_2, window_bounds = array<i64: 64, 64>}, {pipeline_mode = #tpu.pipeline_mode<synchronous>, transform_indices = @transform_3, window_bounds = array<i64: 64, 32>}, {pipeline_mode = #tpu.pipeline_mode<synchronous>, transform_indices = @transform_4, window_bounds = array<i64: 1, 32>}, {transform_indices = @transform_5, window_bounds = array<i64: 32, 32>}]} {
    %c0 = arith.constant 0 : index
    %c0_0 = arith.constant 0 : index
    %0 = vector.load %arg1[%c0, %c0_0] : memref<32x64xbf16, #tpu.memory_space<vmem>>, vector<32x64xbf16>
    %c0_1 = arith.constant 0 : index
    %c0_2 = arith.constant 0 : index
    %1 = vector.load %arg3[%c0_1, %c0_2] : memref<64x64xbf16, #tpu.memory_space<vmem>>, vector<64x64xbf16>
    %cst = arith.constant dense<0.000000e+00> : vector<32x64xf32>
    %2 = tpu.matmul %0, %1, %cst {dimension_numbers = #tpu.dot_dimension_numbers<[1], [0], [0], [1], [0, 0, 1, 1], [], []>} : vector<32x64xbf16>, vector<64x64xbf16>, vector<32x64xf32> -> vector<32x64xf32>
    %cst_3 = arith.constant 3.000000e+00 : f32
    %3 = vector.broadcast %cst_3 : f32 to vector<32x64xf32>
    %4 = arith.addf %2, %3 : vector<32x64xf32>
    %cst_4 = arith.constant 0.000000e+00 : f32
    %cst_5 = arith.constant 6.000000e+00 : f32
    %5 = vector.broadcast %cst_4 : f32 to vector<32x64xf32>
    %6 = arith.maximumf %5, %4 : vector<32x64xf32>
    %7 = vector.broadcast %cst_5 : f32 to vector<32x64xf32>
    %8 = arith.minimumf %7, %6 : vector<32x64xf32>
    %9 = arith.mulf %2, %8 : vector<32x64xf32>
    %cst_6 = arith.constant 0.166666672 : f32
    %10 = vector.broadcast %cst_6 : f32 to vector<32x64xf32>
    %11 = arith.mulf %9, %10 : vector<32x64xf32>
    %12 = arith.truncf %11 : vector<32x64xf32> to vector<32x64xbf16>
    %c0_7 = arith.constant 0 : index
    %c0_8 = arith.constant 0 : index
    %13 = vector.load %arg4[%c0_7, %c0_8] : memref<64x32xbf16, #tpu.memory_space<vmem>>, vector<64x32xbf16>
    %cst_9 = arith.constant dense<0.000000e+00> : vector<32x32xf32>
    %14 = tpu.matmul %12, %13, %cst_9 {dimension_numbers = #tpu.dot_dimension_numbers<[1], [0], [0], [1], [0, 0, 1, 1], [], []>} : vector<32x64xbf16>, vector<64x32xbf16>, vector<32x32xf32> -> vector<32x32xf32>
    %c0_10 = arith.constant 0 : index
    %c0_11 = arith.constant 0 : index
    %15 = vector.load %arg5[%c0_10, %c0_11] : memref<1x32xf32, #tpu.memory_space<vmem>>, vector<1x32xf32>
    %16 = vector.broadcast %15 : vector<1x32xf32> to vector<32x32xf32>
    %17 = arith.addf %14, %16 : vector<32x32xf32>
    %c0_12 = arith.constant 0 : index
    %c0_13 = arith.constant 0 : index
    %18 = vector.load %arg2[%c0_12, %c0_13] : memref<32x32xbf16, #tpu.memory_space<vmem>>, vector<32x32xbf16>
    %19 = arith.extf %18 : vector<32x32xbf16> to vector<32x32xf32>
    %20 = arith.addf %17, %19 : vector<32x32xf32>
    %21 = arith.truncf %20 : vector<32x32xf32> to vector<32x32xbf16>
    %c0_14 = arith.constant 0 : index
    %c0_15 = arith.constant 0 : index
    %22 = vector.load %arg6[%c0_14, %c0_15] : memref<32x32xbf16, #tpu.memory_space<vmem>>, vector<32x32xbf16>
    tpu.vector_store %arg6[%c0_14, %c0_15], %21 {strides = array<i32>} : memref<32x32xbf16, #tpu.memory_space<vmem>>, vector<32x32xbf16>,
    return
  }
  func.func @transform_0(%arg0: i32) -> (i32, i32) {
    %c0_i32 = arith.constant 0 : i32
    %c0_i32_0 = arith.constant 0 : i32
    return %arg0, %c0_i32 : i32, i32
  }
  func.func @transform_1(%arg0: i32) -> (i32, i32) {
    %c0_i32 = arith.constant 0 : i32
    %c0_i32_0 = arith.constant 0 : i32
    return %arg0, %c0_i32 : i32, i32
  }
  func.func @transform_2(%arg0: i32) -> (i32, i32) {
    %c0_i32 = arith.constant 0 : i32
    %c0_i32_0 = arith.constant 0 : i32
    %c0_i32_1 = arith.constant 0 : i32
    return %c0_i32, %c0_i32_0 : i32, i32
  }
  func.func @transform_3(%arg0: i32) -> (i32, i32) {
    %c0_i32 = arith.constant 0 : i32
    %c0_i32_0 = arith.constant 0 : i32
    %c0_i32_1 = arith.constant 0 : i32
    return %c0_i32, %c0_i32_0 : i32, i32
  }
  func.func @transform_4(%arg0: i32) -> (i32, i32) {
    %c0_i32 = arith.constant 0 : i32
    %c0_i32_0 = arith.constant 0 : i32
    %c0_i32_1 = arith.constant 0 : i32
    return %c0_i32, %c0_i32_0 : i32, i32
  }
  func.func @transform_5(%arg0: i32) -> (i32, i32) {
    %c0_i32 = arith.constant 0 : i32
    %c0_i32_0 = arith.constant 0 : i32
    return %arg0, %c0_i32 : i32, i32
  }
}

module attributes {stable_mosaic.version = 11 : i64} {
  func.func @_ln_matmul_kernel(%arg0: i32, %arg1: memref<2x32xbf16, #tpu.memory_space<vmem>>, %arg2: memref<1x32xf32, #tpu.memory_space<vmem>>, %arg3: memref<1x32xf32, #tpu.memory_space<vmem>>, %arg4: memref<32x10xbf16, #tpu.memory_space<vmem>>, %arg5: memref<1x10xf32, #tpu.memory_space<vmem>>, %arg6: memref<2x10xf32, #tpu.memory_space<vmem>>) attributes {dimension_semantics = [#tpu.dimension_semantics<parallel>], iteration_bounds = array<i64: 1>, scalar_prefetch = 0 : i64, scratch_operands = 0 : i64, tpu.core_type = #tpu.core_type<tc>, window_params = [{transform_indices = @transform_0, window_bounds = array<i64: 2, 32>}, {pipeline_mode = #tpu.pipeline_mode<synchronous>, transform_indices = @transform_1, window_bounds = array<i64: 1, 32>}, {pipeline_mode = #tpu.pipeline_mode<synchronous>, transform_indices = @transform_2, window_bounds = array<i64: 1, 32>}, {pipeline_mode = #tpu.pipeline_mode<synchronous>, transform_indices = @transform_3, window_bounds = array<i64: 32, 10>}, {pipeline_mode = #tpu.pipeline_mode<synchronous>, transform_indices = @transform_4, window_bounds = array<i64: 1, 10>}, {transform_indices = @transform_5, window_bounds = array<i64: 2, 10>}]} {
    %c0 = arith.constant 0 : index
    %c0_0 = arith.constant 0 : index
    %0 = vector.load %arg1[%c0, %c0_0] : memref<2x32xbf16, #tpu.memory_space<vmem>>, vector<2x32xbf16>
    %1 = arith.extf %0 : vector<2x32xbf16> to vector<2x32xf32>
    %cst = arith.constant dense<0.000000e+00> : vector<2xf32>
    %2 = vector.multi_reduction <add>, %1, %cst [1] : vector<2x32xf32> to vector<2xf32>
    %3 = vector.shape_cast %2 : vector<2xf32> to vector<2x1xf32>
    %cst_1 = arith.constant 3.200000e+01 : f32
    %4 = vector.broadcast %cst_1 : f32 to vector<2x1xf32>
    %5 = arith.divf %3, %4 : vector<2x1xf32>
    %6 = vector.broadcast %5 : vector<2x1xf32> to vector<2x32xf32>
    %7 = arith.subf %1, %6 : vector<2x32xf32>
    %8 = arith.mulf %7, %7 : vector<2x32xf32>
    %cst_2 = arith.constant dense<0.000000e+00> : vector<2xf32>
    %9 = vector.multi_reduction <add>, %8, %cst_2 [1] : vector<2x32xf32> to vector<2xf32>
    %10 = vector.shape_cast %9 : vector<2xf32> to vector<2x1xf32>
    %cst_3 = arith.constant 3.200000e+01 : f32
    %11 = vector.broadcast %cst_3 : f32 to vector<2x1xf32>
    %12 = arith.divf %10, %11 : vector<2x1xf32>
    %13 = vector.broadcast %5 : vector<2x1xf32> to vector<2x32xf32>
    %14 = arith.subf %1, %13 : vector<2x32xf32>
    %cst_4 = arith.constant 9.99999974E-6 : f32
    %15 = vector.broadcast %cst_4 : f32 to vector<2x1xf32>
    %16 = arith.addf %12, %15 : vector<2x1xf32>
    %17 = math.rsqrt %16 : vector<2x1xf32>
    %18 = vector.broadcast %17 : vector<2x1xf32> to vector<2x32xf32>
    %19 = arith.mulf %14, %18 : vector<2x32xf32>
    %c0_5 = arith.constant 0 : index
    %c0_6 = arith.constant 0 : index
    %20 = vector.load %arg2[%c0_5, %c0_6] : memref<1x32xf32, #tpu.memory_space<vmem>>, vector<1x32xf32>
    %21 = vector.broadcast %20 : vector<1x32xf32> to vector<2x32xf32>
    %22 = arith.mulf %19, %21 : vector<2x32xf32>
    %c0_7 = arith.constant 0 : index
    %c0_8 = arith.constant 0 : index
    %23 = vector.load %arg3[%c0_7, %c0_8] : memref<1x32xf32, #tpu.memory_space<vmem>>, vector<1x32xf32>
    %24 = vector.broadcast %23 : vector<1x32xf32> to vector<2x32xf32>
    %25 = arith.addf %22, %24 : vector<2x32xf32>
    %26 = arith.truncf %25 : vector<2x32xf32> to vector<2x32xbf16>
    %c0_9 = arith.constant 0 : index
    %c0_10 = arith.constant 0 : index
    %27 = vector.load %arg4[%c0_9, %c0_10] : memref<32x10xbf16, #tpu.memory_space<vmem>>, vector<32x10xbf16>
    %cst_11 = arith.constant dense<0.000000e+00> : vector<2x10xf32>
    %28 = tpu.matmul %26, %27, %cst_11 {dimension_numbers = #tpu.dot_dimension_numbers<[1], [0], [0], [1], [0, 0, 1, 1], [], []>} : vector<2x32xbf16>, vector<32x10xbf16>, vector<2x10xf32> -> vector<2x10xf32>
    %c0_12 = arith.constant 0 : index
    %c0_13 = arith.constant 0 : index
    %29 = vector.load %arg5[%c0_12, %c0_13] : memref<1x10xf32, #tpu.memory_space<vmem>>, vector<1x10xf32>
    %30 = vector.broadcast %29 : vector<1x10xf32> to vector<2x10xf32>
    %31 = arith.addf %28, %30 : vector<2x10xf32>
    %c0_14 = arith.constant 0 : index
    %c0_15 = arith.constant 0 : index
    %32 = vector.load %arg6[%c0_14, %c0_15] : memref<2x10xf32, #tpu.memory_space<vmem>>, vector<2x10xf32>
    tpu.vector_store %arg6[%c0_14, %c0_15], %31 {strides = array<i32>} : memref<2x10xf32, #tpu.memory_space<vmem>>, vector<2x10xf32>,
    return
  }
  func.func @transform_0(%arg0: i32) -> (i32, i32) {
    %c0_i32 = arith.constant 0 : i32
    %c0_i32_0 = arith.constant 0 : i32
    return %arg0, %c0_i32 : i32, i32
  }
  func.func @transform_1(%arg0: i32) -> (i32, i32) {
    %c0_i32 = arith.constant 0 : i32
    %c0_i32_0 = arith.constant 0 : i32
    %c0_i32_1 = arith.constant 0 : i32
    return %c0_i32, %c0_i32_0 : i32, i32
  }
  func.func @transform_2(%arg0: i32) -> (i32, i32) {
    %c0_i32 = arith.constant 0 : i32
    %c0_i32_0 = arith.constant 0 : i32
    %c0_i32_1 = arith.constant 0 : i32
    return %c0_i32, %c0_i32_0 : i32, i32
  }
  func.func @transform_3(%arg0: i32) -> (i32, i32) {
    %c0_i32 = arith.constant 0 : i32
    %c0_i32_0 = arith.constant 0 : i32
    %c0_i32_1 = arith.constant 0 : i32
    return %c0_i32, %c0_i32_0 : i32, i32
  }
  func.func @transform_4(%arg0: i32) -> (i32, i32) {
    %c0_i32 = arith.constant 0 : i32
    %c0_i32_0 = arith.constant 0 : i32
    %c0_i32_1 = arith.constant 0 : i32
    return %c0_i32, %c0_i32_0 : i32, i32
  }
  func.func @transform_5(%arg0: i32) -> (i32, i32) {
    %c0_i32 = arith.constant 0 : i32
    %c0_i32_0 = arith.constant 0 : i32
    return %arg0, %c0_i32 : i32, i32
  }
}

</mosaic_0001>

<bundles_post_ra>
// kernel: localvit_forward.10
= control target key start
LH: loop header
LB: loop body
LE: loop exit
PB: predicated region body
PF: predicated region fallthrough
CT: control target
= control target key end

     0   :  { %vm31_vm0 = vcmask 261120   ;;  %vm44_vm1 = vcmask 254976   ;;  %v312_v39 = vmov 0.0   ;;  %vm313_vm2 = vmmov 0   ;;  %s418_s0 = inlined_call_operand.vmem [shape: bf16[34,32], index: 0, kind: input, shape index: {}]   ;;  %s419_s3 = inlined_call_operand.vmem [shape: bf16[32,96], index: 3, kind: input, shape index: {}]   ;;  %s420_s1 = inlined_call_operand.vmem [shape: f32[1,32], index: 1, kind: input, shape index: {}]   ;;  %s421_s2 = inlined_call_operand.vmem [shape: f32[1,32], index: 2, kind: input, shape index: {}]   ;;  %s422_s4 = inlined_call_operand.vmem [shape: f32[1,96], index: 4, kind: input, shape index: {}]   ;;  %s423_s5 = inlined_call_operand.vmem [shape: bf16[34,96], index: 5, kind: output, shape index: {}]  }
   0x1   :  { %v272_v0 = vld [vmem:[%s418_s0 + $0x8] sm:$0xff]   ;;  %v265_v1 = vld [vmem:[%s418_s0] sm:$0xff]   ;;  %v25_v5 = vld [vmem:[%s418_s0 + $0x10] sm:$0x1]  ;;  %294 = vmatprep.subr.bf16.mxu1 %v312_v39  ;;  %278 = vmatprep.subr.bf16.mxu0 %v312_v39  ;;  %vm235_vm3 = vcmask 781312   ;;  %vm240_vm4 = vcmask 778240  }
   0x2   :  { %v270_v2 = vunpack.c.l.bf16 %v272_v0  ;;  %v271_v3 = vunpack.c.h.bf16 %v272_v0  ;;  %v266_v4 = vunpack.c.l.bf16 %v265_v1  ;;  %v267_v6 = vunpack.c.h.bf16 %v265_v1  ;;  %v300_v38 = vld [vmem:[%s419_s3] sm:$0xff]   ;;  %v301_v40 = vld [vmem:[%s419_s3 + $0x8] sm:$0xff]   ;;  %286 = vmatprep.mubr.msk.bf16.mxu1 %vm313_vm2, %v312_v39  ;;  %282 = vmatprep.mubr.msk.bf16.mxu0 %vm313_vm2, %v312_v39 }
   0x3   :  { %v30_v10 = vunpack.c.l.bf16 %v25_v5  ;;  %296 = vmatpush3.bf16.msra.mxu1 %v300_v38  ;;  %279 = vmatpush3.bf16.msra.mxu0 %v300_v38  ;;  %v246_v58 = vld [vmem:[%s420_s1] ss:$0 sm:$0xff] }
   0x4   :  { %v38_v7 = vsel %vm31_vm0, %v270_v2, 0.0  ;;  %v32_v8 = vsel %vm31_vm0, %v266_v4, 0.0  ;;  %v41_v9 = vsel %vm31_vm0, %v271_v3, 0.0  ;;  %v35_v11 = vsel %vm31_vm0, %v267_v6, 0.0  ;;  %295 = vmatprep.subr.bf16.mxu1 %v312_v39  ;;  %280 = vmatprep.subr.bf16.mxu0 %v312_v39  ;;  %v247_v0 = vld [vmem:[%s421_s2] ss:$0 sm:$0xff] }
   0x5   :  { %39 = vadd.xlane.f32.xlu0 %v38_v7  ;;  %33 = vadd.xlane.f32.xlu1 %v32_v8  ;;  %v45_v12 = vsel %vm44_vm1, %v30_v10, 0.0 }
   0x7   :  { %297 = vmatpush3.bf16.msra.mxu1 %v301_v40  ;;  %281 = vmatpush3.bf16.msra.mxu0 %v301_v40 }
   0x9   :  { %42 = vadd.xlane.f32.xlu0 %v41_v9  ;;  %36 = vadd.xlane.f32.xlu1 %v35_v11 }
   0xd   :  { %46 = vadd.xlane.f32.xlu0 %v45_v12 }
  0x92   :  { %v40_v13 = vpop.xlane.xlu0 %39  ;;  %v34_v14 = vpop.xlane.xlu1 %33 }
  0x93   :  { %v51_v15 = vmul.f32 0.03125, %v40_v13  ;;  %v49_v16 = vmul.f32 0.03125, %v34_v14 }
  0x95   :  { %v358_v17 = vsub.f32 %v270_v2, %v51_v15  ;;  %v360_v18 = vsub.f32 %v266_v4, %v49_v16 }
  0x96   :  { %v43_v19 = vpop.xlane.xlu0 %42  ;;  %v37_v20 = vpop.xlane.xlu1 %36 }
  0x97   :  { %v52_v21 = vmul.f32 0.03125, %v43_v19  ;;  %v61_v22 = vmul.f32 %v358_v17, %v358_v17  ;;  %v50_v23 = vmul.f32 0.03125, %v37_v20  ;;  %v59_v24 = vmul.f32 %v360_v18, %v360_v18 }
  0x99   :  { %v57_v25 = vsub.f32 %v271_v3, %v52_v21  ;;  %v70_v26 = vsel %vm31_vm0, %v61_v22, 0.0  ;;  %v367_v27 = vsub.f32 %v267_v6, %v50_v23  ;;  %v64_v31 = vsel %vm31_vm0, %v59_v24, 0.0 }
  0x9a   :  { %v47_v28 = vpop.xlane.xlu0 %46  ;;  %71 = vadd.xlane.f32.xlu1 %v70_v26 }
  0x9b   :  { %v53_v29 = vmul.f32 0.03125, %v47_v28  ;;  %v62_v30 = vmul.f32 %v57_v25, %v57_v25  ;;  %v60_v32 = vmul.f32 %v367_v27, %v367_v27 }
  0x9d   :  { %v58_v33 = vsub.f32 %v30_v10, %v53_v29  ;;  %v73_v34 = vsel %vm31_vm0, %v62_v30, 0.0  ;;  %v67_v36 = vsel %vm31_vm0, %v60_v32, 0.0 }
  0x9e   :  { %74 = vadd.xlane.f32.xlu0 %v73_v34  ;;  %65 = vadd.xlane.f32.xlu1 %v64_v31 }
  0x9f   :  { %v63_v35 = vmul.f32 %v58_v33, %v58_v33 }
  0xa1   :  { %v76_v37 = vsel %vm44_vm1, %v63_v35, 0.0 }
  0xa2   :  { %77 = vadd.xlane.f32.xlu1 %v76_v37  ;;  %68 = vadd.xlane.f32.xlu0 %v67_v36 }
 0x127   :  { %v72_v41 = vpop.xlane.xlu1 %71 }
 0x128   :  { %v81_v42 = vmul.f32 0.03125, %v72_v41 }
 0x12a   :  { %v86_v43 = vadd.f32 1e-05, %v81_v42 }
 0x12b   :  { %v75_v44 = vpop.xlane.xlu0 %74  ;;  %v66_v45 = vpop.xlane.xlu1 %65 }
 0x12c   :  { %302 = vrsqrt.f32 %v86_v43  ;;  %v82_v46 = vmul.f32 0.03125, %v75_v44  ;;  %v79_v47 = vmul.f32 0.03125, %v66_v45 }
 0x12e   :  { %v87_v48 = vadd.f32 1e-05, %v82_v46  ;;  %v84_v49 = vadd.f32 1e-05, %v79_v47 }
 0x12f   :  { %v69_v50 = vpop.xlane.xlu0 %68  ;;  %v78_v51 = vpop.xlane.xlu1 %77 }
 0x130   :  { %304 = vrsqrt.f32 %v87_v48  ;;  %v80_v52 = vmul.f32 0.03125, %v69_v50  ;;  %v83_v53 = vmul.f32 0.03125, %v78_v51 }
 0x131   :  { %306 = vrsqrt.f32 %v84_v49 }
 0x132   :  { %v85_v54 = vadd.f32 1e-05, %v80_v52  ;;  %v88_v55 = vadd.f32 1e-05, %v83_v53 }
 0x134   :  { %308 = vrsqrt.f32 %v85_v54 }
 0x135   :  { %310 = vrsqrt.f32 %v88_v55 }
 0x136   :  { %v303_v56 = vpop.eup %302 }
 0x137   :  { %v96_v57 = vmul.f32 %v303_v56, %v358_v17  ;;  %v248_v17 = vld [vmem:[%s422_s4] ss:$0 sm:$0xff] }
 0x139   :  { %v108_v62 = vmul.f32 %v246_v58, %v96_v57 }
 0x13a   :  { %v305_v59 = vpop.eup %304 }
 0x13b   :  { %v307_v60 = vpop.eup %306  ;;  %v97_v61 = vmul.f32 %v305_v59, %v57_v25  ;;  %v120_v5 = vadd.f32 %v247_v0, %v108_v62 }
 0x13c   :  { %v94_v63 = vmul.f32 %v307_v60, %v360_v18 }
 0x13d   :  { %v109_v1 = vmul.f32 %v246_v58, %v97_v61 }
 0x13e   :  { %v309_v2 = vpop.eup %308  ;;  %v106_v7 = vmul.f32 %v246_v58, %v94_v63 }
 0x13f   :  { %v311_v3 = vpop.eup %310  ;;  %v95_v4 = vmul.f32 %v309_v2, %v367_v27  ;;  %v121_v6 = vadd.f32 %v247_v0, %v109_v1 }
 0x140   :  { %v98_v8 = vmul.f32 %v311_v3, %v58_v33  ;;  %v118_v12 = vadd.f32 %v247_v0, %v106_v7 }
 0x141   :  { %v124_v9 = vpack.c.bf16 %v121_v6, %v120_v5  ;;  %v107_v10 = vmul.f32 %v246_v58, %v95_v4 }
 0x142   :  { %v110_v11 = vmul.f32 %v246_v58, %v98_v8 }
 0x143   :  { %287 = vmatmul.mubr.msk.bf16.vlgmr.msra.gmra.mrb[0].mxu1 %vm31_vm0, %v124_v9  ;;  %v119_v13 = vadd.f32 %v247_v0, %v107_v10 }
 0x144   :  { %290 = vmatprep.mubr.msk.bf16.mxu1 %vm313_vm2, %v312_v39  ;;  %v122_v15 = vadd.f32 %v247_v0, %v110_v11 }
 0x145   :  { %v123_v14 = vpack.c.bf16 %v119_v13, %v118_v12 }
 0x146   :  { %v125_v16 = vpack.c.bf16 %v122_v15, %v122_v15 }
 0x147   :  { %283 = vmatmul.mubr.msk.bf16.vlgmr.msra.gmra.mrb[0].mxu0 %vm31_vm0, %v123_v14 }
 0x14b   :  { %291 = vmatmul.mubr.msk.bf16.gmra.mrb[4].mxu1 %vm31_vm0, %v125_v16 }
 0x216   :  { %v200_v18 = vpop.f32.mrb[0].mxu1 }
 0x217   :  { %v201_v19 = vadd.f32 %v248_v17, %v200_v18  ;;  %v288_v20 = vpop.f32.mrb[1].mxu1 }
 0x218   :  { %v203_v21 = vpop.f32.mrb[2].mxu1 }
 0x219   :  { %v261_v22 = vpack.c.bf16 %v201_v19, %v201_v19  ;;  %v204_v23 = vadd.f32 %v248_v17, %v203_v21  ;;  %v289_v24 = vpop.f32.mrb[3].mxu1 }
 0x21a   :  { %v192_v25 = vpop.f32.mrb[0].mxu0 }
 0x21b   :  { %238 = vst.msk [vmem:[%s423_s5 + $0x8] sm:$0xf] %vm235_vm3, %v261_v22  ;;  %v262_v26 = vpack.c.bf16 %v204_v23, %v204_v23  ;;  %v193_v27 = vadd.f32 %v248_v17, %v192_v25  ;;  %v284_v28 = vpop.f32.mrb[1].mxu0 }
 0x21c   :  { %v195_v29 = vpop.f32.mrb[2].mxu0 }
 0x21d   :  { %239 = vst.msk [vmem:[%s423_s5 + $0xc] sm:$0xf] %vm235_vm3, %v262_v26  ;;  %v259_v30 = vpack.c.bf16 %v193_v27, %v193_v27  ;;  %v196_v31 = vadd.f32 %v248_v17, %v195_v29  ;;  %v285_v32 = vpop.f32.mrb[3].mxu0 }
 0x21e   :  { %v208_v33 = vpop.f32.mrb[4].mxu1 }
 0x21f   :  { %236 = vst.msk [vmem:[%s423_s5] sm:$0xf] %vm235_vm3, %v259_v30  ;;  %v260_v34 = vpack.c.bf16 %v196_v31, %v196_v31  ;;  %v209_v35 = vadd.f32 %v248_v17, %v208_v33  ;;  %v292_v36 = vpop.f32.mrb[5].mxu1 }
 0x220   :  { %v211_v37 = vpop.f32.mrb[6].mxu1 }
 0x221   :  { %237 = vst.msk [vmem:[%s423_s5 + $0x4] sm:$0xf] %vm235_vm3, %v260_v34  ;;  %v263_v38 = vpack.c.bf16 %v209_v35, %v209_v35  ;;  %v293_v39 = vpop.f32.mrb[7].mxu1 }
 0x223   :  { %241 = vst.msk [vmem:[%s423_s5 + $0x10] sm:$0x1] %vm240_vm4, %v263_v38 }

// kernel: localvit_forward.9
= control target key start
LH: loop header
LB: loop body
LE: loop exit
PB: predicated region body
PF: predicated region fallthrough
CT: control target
= control target key end

     0   :  { %vm19_vm0 = vcmask 261120   ;;  %v211_v1 = vmov 0.0   ;;  %vm66_vm1 = vcmask 392192   ;;  %vm165_vm2 = vcmask 257024   ;;  %s270_s1 = inlined_call_operand.vmem [shape: bf16[48,32], index: 1, kind: input, shape index: {}]   ;;  %s271_s0 = inlined_call_operand.vmem [shape: bf16[32,48], index: 0, kind: input, shape index: {}]   ;;  %s272_s2 = inlined_call_operand.vmem [shape: f32[1,32], index: 2, kind: input, shape index: {}]   ;;  %s273_s3 = inlined_call_operand.vmem [shape: bf16[32,32], index: 3, kind: output, shape index: {}]  }
   0x1   :  { %v206_v0 = vld [vmem:[%s270_s1] sm:$0xff]   ;;  %22 = vst.msk [vmem:[#allocation2 + $0x10] sm:$0xff] %vm19_vm0, %v211_v1  ;;  %20 = vst.msk [vmem:[#allocation2] sm:$0xff] %vm19_vm0, %v211_v1  ;;  %v207_v2 = vld [vmem:[%s270_s1 + $0x8] sm:$0xff]  }
   0x2   :  { %21 = vst.msk [vmem:[#allocation2 + $0x8] sm:$0xff] %vm19_vm0, %v211_v1  ;;  %23 = vst.msk [vmem:[#allocation2 + $0x18] sm:$0xff] %vm19_vm0, %v211_v1  ;;  %195 = vmatprep.subr.bf16.mxu0 %v206_v0  ;;  %v209_v3 = vld [vmem:[%s271_s0] sm:$0xff]   ;;  %v208_v4 = vld [vmem:[%s270_s1 + $0x10] sm:$0xff]  }
   0x3   :  { %196 = vmatpush3.bf16.msra.mxu0 %v206_v0  ;;  %201 = vmatprep.mubr.msk.bf16.mxu0 %vm66_vm1, %v209_v3  ;;  %v210_v5 = vld [vmem:[%s271_s0 + $0x8] sm:$0xff]   ;;  %v181_v18 = vld [vmem:[%s272_s2] ss:$0 sm:$0xff] }
   0x4   :  { %197 = vmatprep.subr.bf16.mxu0 %v207_v2 }
   0x7   :  { %198 = vmatpush3.bf16.msra.mxu0 %v207_v2 }
   0x8   :  { %199 = vmatprep.subr.bf16.mxu0 %v208_v4  ;;  %v26_v6 = vld [vmem:[#allocation2 + $0x10] sm:$0xff]  ;;  %v24_v7 = vld [vmem:[#allocation2] sm:$0xff] }
   0x9   :  { %v27_v9 = vld [vmem:[#allocation2 + $0x18] sm:$0xff]  ;;  %v25_v12 = vld [vmem:[#allocation2 + $0x8] sm:$0xff] }
   0xb   :  { %200 = vmatpush3.bf16.msra.mxu0 %v208_v4 }
   0xe   :  { %202 = vmatmul.mubr.msk.bf16.vlgmr.msra.gmra.mrb[0].mxu0 %vm66_vm1, %v210_v5 }
  0xe1   :  { %v203_v8 = vpop.f32.mrb[0].mxu0 }
  0xe2   :  { %v124_v10 = vadd.f32 %v203_v8, %v26_v6  ;;  %v107_v11 = vpop.f32.mrb[1].mxu0 }
  0xe3   :  { %v122_v13 = vadd.f32 %v107_v11, %v24_v7  ;;  %v204_v14 = vpop.f32.mrb[2].mxu0 }
  0xe4   :  { %129 = vst.msk [vmem:[#allocation2 + $0x10] sm:$0xff] %vm19_vm0, %v124_v10  ;;  %v125_v15 = vadd.f32 %v204_v14, %v27_v9  ;;  %v110_v16 = vpop.f32.mrb[3].mxu0 }
  0xe5   :  { %127 = vst.msk [vmem:[#allocation2] sm:$0xff] %vm19_vm0, %v122_v13  ;;  %v123_v17 = vadd.f32 %v110_v16, %v25_v12 }
  0xe6   :  { %130 = vst.msk [vmem:[#allocation2 + $0x18] sm:$0xff] %vm19_vm0, %v125_v15 }
  0xe7   :  { %128 = vst.msk [vmem:[#allocation2 + $0x8] sm:$0xff] %vm19_vm0, %v123_v17 }
  0xeb   :  { %v136_v19 = vld [vmem:[#allocation2 + $0x10] sm:$0xff] }
  0xec   :  { %v147_v20 = vadd.f32 %v181_v18, %v136_v19  ;;  %v134_v21 = vld [vmem:[#allocation2] sm:$0xff] }
  0xed   :  { %v145_v22 = vadd.f32 %v181_v18, %v134_v21  ;;  %v137_v23 = vld [vmem:[#allocation2 + $0x18] sm:$0xff] }
  0xee   :  { %v188_v24 = vpack.c.bf16 %v147_v20, %v147_v20  ;;  %v148_v25 = vadd.f32 %v181_v18, %v137_v23  ;;  %v135_v26 = vld [vmem:[#allocation2 + $0x8] sm:$0xff] }
  0xef   :  { %v186_v27 = vpack.c.bf16 %v145_v22, %v145_v22  ;;  %v146_v28 = vadd.f32 %v181_v18, %v135_v26 }
  0xf0   :  { %168 = vst.msk [vmem:[%s273_s3 + $0x8] sm:$0xf] %vm165_vm2, %v188_v24  ;;  %v189_v29 = vpack.c.bf16 %v148_v25, %v148_v25 }
  0xf1   :  { %166 = vst.msk [vmem:[%s273_s3] sm:$0xf] %vm165_vm2, %v186_v27  ;;  %v187_v30 = vpack.c.bf16 %v146_v28, %v146_v28 }
  0xf2   :  { %169 = vst.msk [vmem:[%s273_s3 + $0xc] sm:$0xf] %vm165_vm2, %v189_v29 }
  0xf3   :  { %167 = vst.msk [vmem:[%s273_s3 + $0x4] sm:$0xf] %vm165_vm2, %v187_v30 }

// kernel: localvit_forward.11
= control target key start
LH: loop header
LB: loop body
LE: loop exit
PB: predicated region body
PF: predicated region fallthrough
CT: control target
= control target key end

     0   :  { %s993_s15 = smov 0   ;;  %s1079_s0 = inlined_call_operand.vmem [shape: bf16[2,17,96], index: 0, kind: input, shape index: {}]   ;;  %s1080_s1 = inlined_call_operand.vmem [shape: bf16[2,17,32], index: 1, kind: input, shape index: {}]   ;;  %s1081_s2 = inlined_call_operand.vmem [shape: bf16[32,32], index: 2, kind: input, shape index: {}]   ;;  %s1082_s3 = inlined_call_operand.vmem [shape: f32[1,32], index: 3, kind: input, shape index: {}]   ;;  %s1083_s4 = inlined_call_operand.vmem [shape: bf16[2,17,32], index: 4, kind: output, shape index: {}]  }
   0x1 LB: > { %s804_s16 = sadd.s32 4294967295, %s960_s15   ;;  %p808_p0 = scmp.ge.s32.totalorder %s960_s15, 1  ;;  %s960_s15 = sphi %s993_s15, %s14_s15  }
   0x2   : > { %p172_p1 = scmp.lt.s32.totalorder %s960_s15, 3 }
   0x4   : > { %p173_p2 = pnand %p808_p0, %p172_p1 }
   0x5   : > { %p203_p3 = scmp.lt.s32.totalorder (!%p173_p2), %s804_s16, 1  ;;  %vm238_vm0 = vcmask (!%p173_p2), 130048   ;;  %s962_s21 = smov (!%p173_p2), 96   ;;  %vm309_vm1 = vcmask (!%p173_p2), 131072   ;;  %vm302_vm2 = vcmask (!%p173_p2), 138240   ;;  %vm350_vm3 = vcmask (!%p173_p2), 1040384  }
   0x6   : > { %176 = sbr.rel (%p173_p2) target bundleno = 1686 (0x696), region = 36  ;;  %s963_s22 = smov (!%p173_p2), 64   ;;  %v966_v35 = vmov (!%p173_p2), 0   ;;  %v928_v53 = vld [vmem:[%s1081_s2] sm:$0xff] (!%p173_p2)   ;;  %vm731_vm4 = vcmask (!%p173_p2), 253952   ;;  %vm728_vm7 = vcmask (!%p173_p2), 257024  }
   0x7   : > { %s964_s23 = smov (!%p173_p2), 80   ;;  %s965_s24 = smov (!%p173_p2), 112   ;;  %v1033_v36 = vsel (!%p173_p2), %vm350_vm3, 65535, %v966_v35  ;;  %vm732_vm5 = vsmask.f32 (!%p173_p2), 256 }
   0x8   : > { %s967_s27 = smov (!%p173_p2), 48   ;;  %vm733_vm6 = vmand (!%p173_p2), %vm731_vm4, %vm732_vm5 }
   0xd   : > { %s1085_s16 = smov (!%p203_p3, %s804_s16), 1 }
   0xe   : > { %s1001_s17 = smul.u32 12, %s1085_s16 }
  0x10   : > { %s207_s20 = scalar_lea.vmem %s1079_s0, %s1001_s17  ;;  %s212_s6 = scalar_lea.vmem %s1080_s1, %s1001_s17 }
  0x11   : > { %v1007_v0 = vld [vmem:[%s207_s20] sm:$0xff]   ;;  %v1010_v1 = vld [vmem:[%s207_s20 + $0x8] ss:$0 sps:$4 sm:$0x11]   ;;  %s217_s11 = scalar_lea.vmem %s1083_s4, %s1001_s17 }
  0x12   : > { %234 = vrot.lane.b32.xlu0 %v1007_v0, %s962_s21  ;;  %867 = vmatprep.mubr.msk.bf16.mxu0 %vm238_vm0, %v1007_v0 }
  0x16   : > { %236 = vrot.lane.b32.xlu0 %v1010_v1, %s962_s21 }
  0x84   : > { %v235_v2 = vpop.permute.xlu0 %234 }
  0x85   : > { %907 = vmatprep.subr.msk.bf16.mxu0 %vm238_vm0, %v235_v2  ;;  %v246_v3 = vsel %vm238_vm0, %v235_v2, 0 }
  0x86   : > { %864 = vmatpush3.bf16.xpose.msra.mxu0 %v246_v3 }
  0x88   : > { %v237_v4 = vpop.permute.xlu0 %236 }
  0x89   : > { %908 = vmatprep.subr.msk.bf16.mxu0 %vm238_vm0, %v237_v4  ;;  %v249_v5 = vsel %vm238_vm0, %v237_v4, 0 }
  0x8e   : > { %866 = vmatpush3.bf16.xpose.msra.mxu0 %v249_v5 }
  0x95   : > { %868 = vmatmul.mubr.msk.bf16.vlgmr.msra.gmra.mrb[0].mxu0 %vm238_vm0, %v1010_v1 }
 0x168   : > { %v869_v6 = vpop.f32.mrb[0].mxu0 }
 0x169   : > { %v301_v7 = vmul.f32 0.25, %v869_v6  ;;  %v285_v8 = vpop.f32.mrb[1].mxu0 }
 0x16a   : > { %v299_v9 = vmul.f32 0.25, %v285_v8  ;;  %v870_v10 = vpop.f32.mrb[2].mxu0 }
 0x16b   : > { %v288_v11 = vpop.f32.mrb[3].mxu0  ;;  %v310_v12 = vsel %vm309_vm1, %v301_v7, -inf }
 0x16c   : > { %v300_v13 = vmul.f32 0.25, %v288_v11  ;;  %311 = vmax.xlane.f32.xlu0 %v310_v12  ;;  %v303_v14 = vsel %vm302_vm2, %v299_v9, -inf }
 0x16d   : > { %304 = vmax.xlane.f32.xlu1 %v303_v14 }
 0x16e   : > { %v306_v15 = vsel %vm302_vm2, %v300_v13, -inf }
 0x171   : > { %307 = vmax.xlane.f32.xlu1 %v306_v15 }
 0x182   : > { %339 = vrot.lane.b32.xlu1 %v1007_v0, %s963_s22  ;;  %410 = vrot.lane.b32.xlu0 %v1007_v0, %s964_s23 }
 0x1f9   : > { %v312_v16 = vpop.xlane.xlu0 %311 }
 0x1fa   : > { %v315_v17 = vsub.f32 %v301_v7, %v312_v16  ;;  %v305_v18 = vpop.xlane.xlu1 %304 }
 0x1fb   : > { %v313_v19 = vsub.f32 %v299_v9, %v305_v18 }
 0x1fc   : > { %v320_v20 = vmul.f32 1.442695, %v315_v17 }
 0x1fd   : > { %v316_v21 = vmul.f32 1.442695, %v313_v19  ;;  %v411_v39 = vpop.permute.xlu0 %410 }
 0x1fe   : > { %930 = vpow2.f32 %v320_v20  ;;  %v308_v22 = vpop.xlane.xlu1 %307  ;;  %v421_v48 = vsel %vm238_vm0, %v411_v39, 0 }
 0x1ff   : > { %v314_v23 = vsub.f32 %v300_v13, %v308_v22  ;;  %932 = vpow2.f32 %v316_v21 }
 0x201   : > { %v318_v24 = vmul.f32 1.442695, %v314_v23 }
 0x202   : > { %v340_v25 = vpop.permute.xlu1 %339 }
 0x203   : > { %871 = vmatprep.subr.bf16.mxu1 %v340_v25  ;;  %934 = vpow2.f32 %v318_v24 }
 0x204   : > { %872 = vmatpush3.bf16.msra.mxu1 %v340_v25 }
 0x208   : > { %v931_v26 = vpop.eup %930 }
 0x209   : > { %v328_v27 = vsel %vm309_vm1, %v931_v26, 0.0  ;;  %v933_v28 = vpop.eup %932 }
 0x20a   : > { %329 = vadd.xlane.f32.xlu1 %v328_v27  ;;  %v322_v29 = vsel %vm302_vm2, %v933_v28, 0.0 }
 0x20d   : > { %v935_v30 = vpop.eup %934 }
 0x20e   : > { %323 = vadd.xlane.f32.xlu1 %v322_v29  ;;  %v325_v31 = vsel %vm302_vm2, %v935_v30, 0.0 }
 0x212   : > { %326 = vadd.xlane.f32.xlu1 %v325_v31 }
 0x223   : > { %341 = vrot.lane.b32.xlu1 %v1010_v1, %s963_s22 }
 0x227   : > { %412 = vrot.lane.b32.xlu1 %v1010_v1, %s964_s23 }
 0x22b   : > { %406 = vrot.lane.b32.xlu1 %v1007_v0, %s965_s24 }
 0x22f   : > { %408 = vrot.lane.b32.xlu1 %v1010_v1, %s965_s24 }
 0x297   : > { %v330_v32 = vpop.xlane.xlu1 %329 }
 0x298   : > { %936 = vrcp.f32 %v330_v32 }
 0x29b   : > { %v324_v33 = vpop.xlane.xlu1 %323 }
 0x29c   : > { %938 = vrcp.f32 %v324_v33 }
 0x29f   : > { %v327_v34 = vpop.xlane.xlu1 %326 }
 0x2a0   : > { %940 = vrcp.f32 %v327_v34 }
 0x2a2   : > { %v937_v40 = vpop.eup %936 }
 0x2a3   : > { %v342_v37 = vpop.permute.xlu1 %341  ;;  %v336_v44 = vmul.f32 %v937_v40, %v931_v26 }
 0x2a4   : > { %v354_v38 = vand.u32 %v1033_v36, %v342_v37 }
 0x2a5   : > { %v338_v49 = vpack.c.bf16 %v336_v44, %v336_v44 }
 0x2a6   : > { %873 = vmatprep.subr.bf16.mxu1 %v354_v38  ;;  %v939_v41 = vpop.eup %938 }
 0x2a7   : > { %874 = vmatpush3.bf16.msra.mxu1 %v354_v38  ;;  %v413_v42 = vpop.permute.xlu1 %412  ;;  %v334_v45 = vmul.f32 %v939_v41, %v933_v28 }
 0x2a8   : > { %909 = vmatprep.subr.msk.bf16.mxu1 %vm238_vm0, %v411_v39  ;;  %v424_v51 = vsel %vm238_vm0, %v413_v42, 0 }
 0x2aa   : > { %v941_v43 = vpop.eup %940 }
 0x2ab   : > { %v335_v46 = vmul.f32 %v941_v43, %v935_v30  ;;  %v407_v50 = vpop.permute.xlu1 %406 }
 0x2ad   : > { %v337_v47 = vpack.c.bf16 %v335_v46, %v334_v45  ;;  %v708_v46 = vld [vmem:[%s212_s6 + $0x8] sm:$0x1] }
 0x2af   : > { %875 = vmatprep.mubr.msk.bf16.mxu1 %vm302_vm2, %v337_v47  ;;  %v409_v52 = vpop.permute.xlu1 %408  ;;  %v838_v47 = vld [vmem:[%s212_s6] sm:$0xff]  }
 0x2b0   : > { %876 = vmatmul.mubr.msk.bf16.vlgmr.msra.gmra.mrb[0].mxu1 %vm302_vm2, %v338_v49  ;;  %v828_v49 = vld [vmem:[%s1082_s3] ss:$0 sm:$0xff] }
 0x2b1   : > { %880 = vmatpush3.bf16.xpose.msra.mxu1 %v421_v48  ;;  %883 = vmatprep.mubr.msk.bf16.mxu1 %vm238_vm0, %v407_v50 }
 0x2b2   : > { %910 = vmatprep.subr.msk.bf16.mxu1 %vm238_vm0, %v413_v42 }
 0x2b9   : > { %882 = vmatpush3.bf16.xpose.msra.mxu1 %v424_v51  ;;  %v711_v51 = vunpack.c.l.bf16 %v708_v46 }
 0x2ba   : > { %901 = vmatprep.subr.bf16.mxu1 %v928_v53 }
 0x2c0   : > { %884 = vmatmul.mubr.msk.bf16.vlgmr.msra.gmra.mrb[4].mxu1 %vm238_vm0, %v409_v52 }
 0x2c1   : > { %902 = vmatpush3.bf16.msra.mxu1 %v928_v53 }
 0x383   : > { %v877_v54 = vpop.f32.mrb[0].mxu1 }
 0x384   : > { %v390_v55 = vpop.f32.mrb[1].mxu1  ;;  %v405_v59 = vpack.c.bf16 %v877_v54, %v877_v54  ;;  %v839_v54 = vunpack.c.l.bf16 %v838_v47 }
 0x385   : > { %v878_v56 = vpop.f32.mrb[2].mxu1 }
 0x386   : > { %v393_v57 = vpop.f32.mrb[3].mxu1 }
 0x387   : > { %v404_v58 = vpack.c.bf16 %v393_v57, %v390_v55 }
 0x389   : > { %903 = vmatprep.mubr.msk.bf16.mxu1 %vm238_vm0, %v404_v58 }
 0x38a   : > { %904 = vmatmul.mubr.msk.bf16.vlgmr.msra.gmra.mrb[8].mxu1 %vm238_vm0, %v405_v59 }
 0x393   : > { %v885_v60 = vpop.f32.mrb[4].mxu1 }
 0x394   : > { %v460_v61 = vpop.f32.mrb[5].mxu1  ;;  %v476_v3 = vmul.f32 0.25, %v885_v60  ;;  %v840_v60 = vunpack.c.h.bf16 %v838_v47 }
 0x395   : > { %v474_v62 = vmul.f32 0.25, %v460_v61  ;;  %v886_v63 = vpop.f32.mrb[6].mxu1 }
 0x396   : > { %v463_v2 = vpop.f32.mrb[7].mxu1  ;;  %v483_v7 = vsel %vm309_vm1, %v476_v3, -inf }
 0x397   : > { %v475_v4 = vmul.f32 0.25, %v463_v2  ;;  %v477_v5 = vsel %vm302_vm2, %v474_v62, -inf }
 0x398   : > { %478 = vmax.xlane.f32.xlu1 %v477_v5 }
 0x399   : > { %v480_v6 = vsel %vm302_vm2, %v475_v4, -inf }
 0x39a   : > { %481 = vmax.xlane.f32.xlu0 %v480_v6 }
 0x39c   : > { %484 = vmax.xlane.f32.xlu1 %v483_v7 }
 0x425   : > { %v479_v8 = vpop.xlane.xlu1 %478 }
 0x426   : > { %v486_v10 = vsub.f32 %v474_v62, %v479_v8  ;;  %v734_v62 = vld [vmem:[%s217_s11 + $0x8] sm:$0x1] }
 0x427   : > { %v482_v9 = vpop.xlane.xlu0 %481 }
 0x428   : > { %v487_v11 = vsub.f32 %v475_v4, %v482_v9  ;;  %v489_v15 = vmul.f32 1.442695, %v486_v10 }
 0x429   : > { %v485_v12 = vpop.xlane.xlu1 %484 }
 0x42a   : > { %v491_v13 = vmul.f32 1.442695, %v487_v11  ;;  %v488_v14 = vsub.f32 %v476_v3, %v485_v12 }
 0x42c   : > { %942 = vpow2.f32 %v491_v13  ;;  %v493_v16 = vmul.f32 1.442695, %v488_v14 }
 0x42e   : > { %944 = vpow2.f32 %v493_v16 }
 0x42f   : > { %946 = vpow2.f32 %v489_v15 }
 0x436   : > { %v943_v17 = vpop.eup %942 }
 0x437   : > { %v498_v18 = vsel %vm302_vm2, %v943_v17, 0.0 }
 0x438   : > { %v945_v19 = vpop.eup %944  ;;  %499 = vadd.xlane.f32.xlu1 %v498_v18 }
 0x439   : > { %v501_v20 = vsel %vm309_vm1, %v945_v19, 0.0  ;;  %v947_v21 = vpop.eup %946 }
 0x43a   : > { %502 = vadd.xlane.f32.xlu0 %v501_v20  ;;  %v495_v22 = vsel %vm302_vm2, %v947_v21, 0.0 }
 0x43e   : > { %496 = vadd.xlane.f32.xlu0 %v495_v22 }
 0x449   : > { %512 = vrot.lane.b32.xlu1 %v1007_v0, %s967_s27  ;;  %v929_v0 = vld [vmem:[%s1081_s2 + $0x8] sm:$0xff]  }
 0x454   : > { %514 = vrot.lane.b32.xlu0 %v1010_v1, %s967_s27 }
 0x45d   : > { %v905_v23 = vpop.f32.mrb[8].mxu1 }
 0x45e   : > { %v682_v24 = vpop.f32.mrb[9].mxu1 }
 0x45f   : > { %v906_v25 = vpop.f32.mrb[10].mxu1 }
 0x460   : > { %v685_v26 = vpop.f32.mrb[11].mxu1 }
 0x4c5   : > { %v500_v27 = vpop.xlane.xlu1 %499 }
 0x4c7   : > { %v503_v28 = vpop.xlane.xlu0 %502 }
 0x4c8   : > { %948 = vrcp.f32 %v503_v28 }
 0x4c9   : > { %v513_v29 = vpop.permute.xlu1 %512  ;;  %950 = vrcp.f32 %v500_v27 }
 0x4ca   : > { %887 = vmatprep.subr.bf16.mxu0 %v513_v29 }
 0x4cb   : > { %v497_v30 = vpop.xlane.xlu0 %496  ;;  %888 = vmatpush3.bf16.msra.mxu0 %v513_v29 }
 0x4cc   : > { %952 = vrcp.f32 %v497_v30 }
 0x4cf   : > { %v515_v31 = vpop.permute.xlu0 %514 }
 0x4d0   : > { %v524_v32 = vand.u32 %v515_v31, %v1033_v36 }
 0x4d2   : > { %889 = vmatprep.subr.bf16.mxu0 %v524_v32  ;;  %v949_v1 = vpop.eup %948 }
 0x4d3   : > { %890 = vmatpush3.bf16.msra.mxu0 %v524_v32  ;;  %v951_v33 = vpop.eup %950  ;;  %v509_v35 = vmul.f32 %v949_v1, %v945_v19 }
 0x4d4   : > { %895 = vmatprep.subr.bf16.mxu0 %v929_v0  ;;  %v508_v38 = vmul.f32 %v951_v33, %v943_v17 }
 0x4d5   : > { %v511_v40 = vpack.c.bf16 %v509_v35, %v509_v35 }
 0x4d6   : > { %v953_v34 = vpop.eup %952 }
 0x4d7   : > { %v507_v37 = vmul.f32 %v953_v34, %v947_v21 }
 0x4d9   : > { %v510_v39 = vpack.c.bf16 %v508_v38, %v507_v37 }
 0x4db   : > { %891 = vmatprep.mubr.msk.bf16.mxu0 %vm302_vm2, %v510_v39 }
 0x4dc   : > { %892 = vmatmul.mubr.msk.bf16.vlgmr.msra.gmra.mrb[4].mxu0 %vm302_vm2, %v511_v40 }
 0x4dd   : > { %896 = vmatpush3.bf16.msra.mxu0 %v929_v0 }
 0x5af   : > { %v893_v36 = vpop.f32.mrb[4].mxu0 }
 0x5b0   : > { %v560_v41 = vpop.f32.mrb[5].mxu0  ;;  %v575_v45 = vpack.c.bf16 %v893_v36, %v893_v36 }
 0x5b1   : > { %v894_v42 = vpop.f32.mrb[6].mxu0 }
 0x5b2   : > { %v563_v43 = vpop.f32.mrb[7].mxu0 }
 0x5b3   : > { %v574_v44 = vpack.c.bf16 %v563_v43, %v560_v41 }
 0x5b5   : > { %897 = vmatprep.mubr.msk.bf16.mxu0 %vm238_vm0, %v574_v44 }
 0x5b6   : > { %898 = vmatmul.mubr.msk.bf16.vlgmr.msra.gmra.mrb[8].mxu0 %vm238_vm0, %v575_v45 }
 0x689   : > { %v899_v48 = vpop.f32.mrb[8].mxu0 }
 0x68a   : > { %v691_v50 = vadd.f32 %v905_v23, %v899_v48  ;;  %v622_v52 = vpop.f32.mrb[9].mxu0 }
 0x68b   : > { %v683_v53 = vadd.f32 %v682_v24, %v622_v52  ;;  %v900_v55 = vpop.f32.mrb[10].mxu0 }
 0x68c   : > { %v705_v56 = vadd.f32 %v828_v49, %v691_v50  ;;  %v625_v57 = vpop.f32.mrb[11].mxu0 }
 0x68d   : > { %v703_v58 = vadd.f32 %v828_v49, %v683_v53  ;;  %v686_v59 = vadd.f32 %v685_v26, %v625_v57 }
 0x68e   : > { %v714_v61 = vadd.f32 %v711_v51, %v705_v56 }
 0x68f   : > { %v712_v63 = vadd.f32 %v839_v54, %v703_v58  ;;  %v704_v2 = vadd.f32 %v828_v49, %v686_v59 }
 0x690   : > { %v836_v3 = vpack.c.bf16 %v714_v61, %v714_v61 }
 0x691   : > { %v834_v4 = vpack.c.bf16 %v712_v63, %v712_v63  ;;  %v713_v5 = vadd.f32 %v840_v60, %v704_v2 }
 0x692   : > { %v735_v6 = vsel %vm733_vm6, %v836_v3, %v734_v62 }
 0x693   : > { %736 = vst [vmem:[%s217_s11 + $0x8] sm:$0x1] %v735_v6  ;;  %729 = vst.msk [vmem:[%s217_s11] sm:$0xf] %vm728_vm7, %v834_v4  ;;  %v835_v7 = vpack.c.bf16 %v713_v5, %v713_v5 }
 0x695   : > { %730 = vst.msk [vmem:[%s217_s11 + $0x4] sm:$0xf] %vm728_vm7, %v835_v7 }
 0x696 PF: > { %s14_s15 = sadd.s32 1, %s960_s15  }
 0x697   : > { %p11_p4 = scmp.ge.s32.totalorder %s14_s15, 4  }
 0x699   :  { %13 = sbr.rel (!%p11_p4) target bundleno = 1 (0x1), region = 69 }

// kernel: localvit_forward.12
= control target key start
LH: loop header
LB: loop body
LE: loop exit
PB: predicated region body
PF: predicated region fallthrough
CT: control target
= control target key end

     0   :  { %vm29_vm0 = vcmask 261120   ;;  %vm221_vm1 = vcmask 519168   ;;  %s349_s0 = inlined_call_operand.vmem [shape: bf16[32,32], index: 0, kind: input, shape index: {}]   ;;  %s350_s3 = inlined_call_operand.vmem [shape: bf16[32,64], index: 3, kind: input, shape index: {}]   ;;  %s351_s1 = inlined_call_operand.vmem [shape: f32[1,32], index: 1, kind: input, shape index: {}]   ;;  %s352_s2 = inlined_call_operand.vmem [shape: f32[1,32], index: 2, kind: input, shape index: {}]   ;;  %s353_s4 = inlined_call_operand.vmem [shape: f32[1,64], index: 4, kind: input, shape index: {}]   ;;  %s354_s5 = inlined_call_operand.vmem [shape: bf16[32,64], index: 5, kind: output, shape index: {}]  }
   0x1   :  { %v246_v0 = vld [vmem:[%s349_s0] sm:$0xff]   ;;  %v253_v1 = vld [vmem:[%s349_s0 + $0x8] sm:$0xff]  }
   0x2   :  { %v247_v2 = vunpack.c.l.bf16 %v246_v0  ;;  %v251_v3 = vunpack.c.l.bf16 %v253_v1  ;;  %v248_v4 = vunpack.c.h.bf16 %v246_v0  ;;  %v252_v5 = vunpack.c.h.bf16 %v253_v1  ;;  %v266_v30 = vld [vmem:[%s350_s3] sm:$0xff]   ;;  %v267_v31 = vld [vmem:[%s350_s3 + $0x8] sm:$0xff]  }
   0x3   :  { %258 = vmatprep.subr.bf16.mxu0 %v266_v30  ;;  %v230_v46 = vld [vmem:[%s351_s1] ss:$0 sm:$0xff] }
   0x4   :  { %v30_v6 = vsel %vm29_vm0, %v247_v2, 0.0  ;;  %v36_v7 = vsel %vm29_vm0, %v251_v3, 0.0  ;;  %v33_v8 = vsel %vm29_vm0, %v248_v4, 0.0  ;;  %v39_v9 = vsel %vm29_vm0, %v252_v5, 0.0  ;;  %259 = vmatpush3.bf16.msra.mxu0 %v266_v30  ;;  %v231_v52 = vld [vmem:[%s352_s2] ss:$0 sm:$0xff] }
   0x5   :  { %31 = vadd.xlane.f32.xlu0 %v30_v6  ;;  %37 = vadd.xlane.f32.xlu1 %v36_v7  ;;  %v232_v0 = vld [vmem:[%s353_s4] ss:$0 sm:$0xff] }
   0x6   :  { %260 = vmatprep.subr.bf16.mxu0 %v267_v31 }
   0x8   :  { %261 = vmatpush3.bf16.msra.mxu0 %v267_v31 }
   0x9   :  { %34 = vadd.xlane.f32.xlu0 %v33_v8  ;;  %40 = vadd.xlane.f32.xlu1 %v39_v9 }
  0x92   :  { %v32_v10 = vpop.xlane.xlu0 %31  ;;  %v38_v11 = vpop.xlane.xlu1 %37 }
  0x93   :  { %v43_v12 = vmul.f32 0.03125, %v32_v10  ;;  %v45_v13 = vmul.f32 0.03125, %v38_v11 }
  0x95   :  { %v47_v14 = vsub.f32 %v247_v2, %v43_v12  ;;  %v49_v15 = vsub.f32 %v251_v3, %v45_v13 }
  0x96   :  { %v35_v16 = vpop.xlane.xlu0 %34  ;;  %v41_v17 = vpop.xlane.xlu1 %40 }
  0x97   :  { %v44_v18 = vmul.f32 0.03125, %v35_v16  ;;  %v46_v19 = vmul.f32 0.03125, %v41_v17  ;;  %v51_v20 = vmul.f32 %v47_v14, %v47_v14  ;;  %v53_v21 = vmul.f32 %v49_v15, %v49_v15 }
  0x99   :  { %v48_v22 = vsub.f32 %v248_v4, %v44_v18  ;;  %v50_v23 = vsub.f32 %v252_v5, %v46_v19  ;;  %v55_v24 = vsel %vm29_vm0, %v51_v20, 0.0  ;;  %v61_v25 = vsel %vm29_vm0, %v53_v21, 0.0 }
  0x9a   :  { %56 = vadd.xlane.f32.xlu0 %v55_v24 }
  0x9b   :  { %v52_v26 = vmul.f32 %v48_v22, %v48_v22  ;;  %v54_v27 = vmul.f32 %v50_v23, %v50_v23 }
  0x9d   :  { %v58_v28 = vsel %vm29_vm0, %v52_v26, 0.0  ;;  %v64_v29 = vsel %vm29_vm0, %v54_v27, 0.0 }
  0x9e   :  { %62 = vadd.xlane.f32.xlu0 %v61_v25  ;;  %59 = vadd.xlane.f32.xlu1 %v58_v28 }
  0xa2   :  { %65 = vadd.xlane.f32.xlu1 %v64_v29 }
 0x127   :  { %v57_v32 = vpop.xlane.xlu0 %56 }
 0x128   :  { %v67_v33 = vmul.f32 0.03125, %v57_v32 }
 0x12a   :  { %v71_v34 = vadd.f32 1e-05, %v67_v33 }
 0x12b   :  { %v60_v35 = vpop.xlane.xlu1 %59  ;;  %v63_v36 = vpop.xlane.xlu0 %62 }
 0x12c   :  { %268 = vrsqrt.f32 %v71_v34  ;;  %v68_v37 = vmul.f32 0.03125, %v60_v35  ;;  %v69_v38 = vmul.f32 0.03125, %v63_v36 }
 0x12e   :  { %v72_v39 = vadd.f32 1e-05, %v68_v37  ;;  %v73_v40 = vadd.f32 1e-05, %v69_v38 }
 0x12f   :  { %v66_v41 = vpop.xlane.xlu1 %65 }
 0x130   :  { %270 = vrsqrt.f32 %v72_v39  ;;  %v70_v42 = vmul.f32 0.03125, %v66_v41 }
 0x131   :  { %272 = vrsqrt.f32 %v73_v40 }
 0x132   :  { %v74_v43 = vadd.f32 1e-05, %v70_v42 }
 0x134   :  { %274 = vrsqrt.f32 %v74_v43 }
 0x136   :  { %v269_v44 = vpop.eup %268 }
 0x137   :  { %v79_v45 = vmul.f32 %v269_v44, %v47_v14 }
 0x139   :  { %v90_v50 = vmul.f32 %v230_v46, %v79_v45 }
 0x13a   :  { %v271_v47 = vpop.eup %270 }
 0x13b   :  { %v273_v48 = vpop.eup %272  ;;  %v80_v49 = vmul.f32 %v271_v47, %v48_v22  ;;  %v101_v56 = vadd.f32 %v231_v52, %v90_v50 }
 0x13c   :  { %v81_v51 = vmul.f32 %v273_v48, %v49_v15 }
 0x13d   :  { %v91_v53 = vmul.f32 %v230_v46, %v80_v49 }
 0x13e   :  { %v275_v54 = vpop.eup %274  ;;  %v92_v58 = vmul.f32 %v230_v46, %v81_v51 }
 0x13f   :  { %v82_v55 = vmul.f32 %v275_v54, %v50_v23  ;;  %v102_v57 = vadd.f32 %v231_v52, %v91_v53 }
 0x140   :  { %v103_v61 = vadd.f32 %v231_v52, %v92_v58 }
 0x141   :  { %v105_v59 = vpack.c.bf16 %v102_v57, %v101_v56  ;;  %v93_v60 = vmul.f32 %v230_v46, %v82_v55 }
 0x143   :  { %262 = vmatprep.mubr.msk.bf16.mxu0 %vm29_vm0, %v105_v59  ;;  %v104_v62 = vadd.f32 %v231_v52, %v93_v60 }
 0x145   :  { %v106_v63 = vpack.c.bf16 %v104_v62, %v103_v61 }
 0x147   :  { %263 = vmatmul.mubr.msk.bf16.vlgmr.msra.gmra.mrb[0].mxu0 %vm29_vm0, %v106_v63 }
 0x21a   :  { %v264_v1 = vpop.f32.mrb[0].mxu0 }
 0x21b   :  { %v179_v2 = vadd.f32 %v264_v1, %v232_v0  ;;  %v170_v3 = vpop.f32.mrb[1].mxu0 }
 0x21c   :  { %v171_v4 = vadd.f32 %v232_v0, %v170_v3  ;;  %v265_v5 = vpop.f32.mrb[2].mxu0 }
 0x21d   :  { %v187_v6 = vadd.f32 3.0, %v179_v2  ;;  %v182_v7 = vadd.f32 %v265_v5, %v232_v0  ;;  %v173_v8 = vpop.f32.mrb[3].mxu0 }
 0x21e   :  { %v185_v9 = vadd.f32 3.0, %v171_v4  ;;  %v174_v10 = vadd.f32 %v232_v0, %v173_v8 }
 0x21f   :  { %v191_v11 = vmax.f32 %v187_v6, 0.0  ;;  %v188_v12 = vadd.f32 3.0, %v182_v7 }
 0x220   :  { %v189_v13 = vmax.f32 %v185_v9, 0.0  ;;  %v186_v14 = vadd.f32 3.0, %v174_v10 }
 0x221   :  { %v195_v15 = vmin.f32 %v191_v11, 6.0  ;;  %v192_v16 = vmax.f32 %v188_v12, 0.0 }
 0x222   :  { %v193_v17 = vmin.f32 %v189_v13, 6.0  ;;  %v190_v18 = vmax.f32 %v186_v14, 0.0 }
 0x223   :  { %v199_v19 = vmul.f32 %v195_v15, %v179_v2  ;;  %v196_v20 = vmin.f32 %v192_v16, 6.0 }
 0x224   :  { %v197_v21 = vmul.f32 %v193_v17, %v171_v4  ;;  %v194_v22 = vmin.f32 %v190_v18, 6.0 }
 0x225   :  { %v203_v23 = vmul.f32 0.16666667, %v199_v19  ;;  %v200_v24 = vmul.f32 %v196_v20, %v182_v7 }
 0x226   :  { %v201_v25 = vmul.f32 0.16666667, %v197_v21  ;;  %v198_v26 = vmul.f32 %v194_v22, %v174_v10 }
 0x227   :  { %v243_v27 = vpack.c.bf16 %v203_v23, %v203_v23  ;;  %v204_v28 = vmul.f32 0.16666667, %v200_v24 }
 0x228   :  { %v241_v29 = vpack.c.bf16 %v201_v25, %v201_v25  ;;  %v202_v30 = vmul.f32 0.16666667, %v198_v26 }
 0x229   :  { %224 = vst.msk [vmem:[%s354_s5 + $0x8] sm:$0xf] %vm221_vm1, %v243_v27  ;;  %v244_v31 = vpack.c.bf16 %v204_v28, %v204_v28 }
 0x22a   :  { %222 = vst.msk [vmem:[%s354_s5] sm:$0xf] %vm221_vm1, %v241_v29  ;;  %v242_v32 = vpack.c.bf16 %v202_v30, %v202_v30 }
 0x22b   :  { %225 = vst.msk [vmem:[%s354_s5 + $0xc] sm:$0xf] %vm221_vm1, %v244_v31 }
 0x22c   :  { %223 = vst.msk [vmem:[%s354_s5 + $0x4] sm:$0xf] %vm221_vm1, %v242_v32 }

// kernel: localvit_forward.13
= control target key start
LH: loop header
LB: loop body
LE: loop exit
PB: predicated region body
PF: predicated region fallthrough
CT: control target
= control target key end

     0   :  { %s445_s9 = smov 0   ;;  %s552_s0 = inlined_call_operand.vmem [shape: bf16[2,6,6,64], index: 0, kind: input, shape index: {}]   ;;  %s553_s1 = inlined_call_operand.vmem [shape: bf16[3,3,64], index: 1, kind: input, shape index: {}]   ;;  %s554_s2 = inlined_call_operand.vmem [shape: bf16[2,4,4,64], index: 2, kind: output, shape index: {}]  }
   0x1 LB: > { %s402_s10 = sadd.s32 4294967295, %s428_s9   ;;  %p406_p0 = scmp.ge.s32.totalorder %s428_s9, 1  ;;  %s428_s9 = sphi %s445_s9, %s12_s9  }
   0x2   : > { %p112_p1 = scmp.lt.s32.totalorder %s428_s9, 3 }
   0x4   : > { %p113_p2 = pnand %p406_p0, %p112_p1 }
   0x5   : > { %p134_p3 = scmp.lt.s32.totalorder (!%p113_p2), %s402_s10, 1  ;;  %v156_v0 = vld [vmem:[%s553_s1] sm:$0x3] (!%p113_p2)  ;;  %v157_v1 = vld [vmem:[%s553_s1 + $0x2] sm:$0x3] (!%p113_p2)  ;;  %v162_v2 = vlaneseq (!%p113_p2)  ;;  %vm342_vm0 = vcmask (!%p113_p2), 517120  }
   0x6   : > { %116 = sbr.rel (%p113_p2) target bundleno = 55 (0x37), region = 28  ;;  %v158_v3 = vld [vmem:[%s553_s1 + $0x4] sm:$0x3] (!%p113_p2)  ;;  %v159_v4 = vunpack.c.l.bf16 (!%p113_p2), %v156_v0  ;;  %v160_v6 = vunpack.c.l.bf16 (!%p113_p2), %v157_v1 }
   0x7   : > { %v163_v5 = vshrl.u32 (!%p113_p2), %v162_v2, 7  ;;  %v161_v7 = vunpack.c.l.bf16 (!%p113_p2), %v158_v3 }
   0x9   : > { %v164_v8 = vsub.s32 (!%p113_p2), 0, %v163_v5  ;;  %v172_v9 = vsub.s32 (!%p113_p2), 1, %v163_v5  ;;  %v196_v10 = vsub.s32 (!%p113_p2), 2, %v163_v5 }
   0xb   : > { %v468_v11 = vrot.slane (!%p113_p2), %v159_v4, %v164_v8  ;;  %v470_v12 = vrot.slane (!%p113_p2), %v159_v4, %v172_v9  ;;  %v472_v13 = vrot.slane (!%p113_p2), %v159_v4, %v196_v10  ;;  %v474_v17 = vrot.slane (!%p113_p2), %v160_v6, %v172_v9 }
   0xc   : > { %v476_v20 = vrot.slane (!%p113_p2), %v160_v6, %v196_v10  ;;  %v478_v21 = vrot.slane (!%p113_p2), %v161_v7, %v172_v9  ;;  %v480_v24 = vrot.slane (!%p113_p2), %v160_v6, %v164_v8  ;;  %v485_v29 = vrot.slane (!%p113_p2), %v161_v7, %v196_v10 }
   0xd   : > { %s556_s10 = smov (!%p134_p3, %s402_s10), 1  ;;  %v488_v33 = vrot.slane %v161_v7, %v164_v8 }
   0xe   : > { %s413_s17 = smul.u32 24, %s556_s10  ;;  %s412_s21 = sshll.u32 %s556_s10, 3 }
   0xf   : > { %s533_s24 = scalar_lea.vmem %s554_s2, %s412_s21 }
  0x10   : > { %s138_s20 = scalar_lea.vmem %s552_s0, %s413_s17 }
  0x11   : > { %v144_v14 = vld [vmem:[%s138_s20] sm:$0x7]  ;;  %v145_v15 = vld [vmem:[%s138_s20 + $0x4] sm:$0x7]  ;;  %v146_v16 = vld [vmem:[%s138_s20 + $0x8] sm:$0x7] }
  0x12   : > { %v147_v18 = vld [vmem:[%s138_s20 + $0xc] sm:$0x7]  ;;  %v150_v19 = vunpack.c.l.bf16 %v144_v14  ;;  %v151_v22 = vunpack.c.l.bf16 %v145_v15  ;;  %v152_v23 = vunpack.c.l.bf16 %v146_v16  ;;  %v148_v25 = vld [vmem:[%s138_s20 + $0x10] sm:$0x7]  ;;  %v149_v30 = vld [vmem:[%s138_s20 + $0x14] sm:$0x7] }
  0x13   : > { %v153_v31 = vunpack.c.l.bf16 %v147_v18  ;;  %v492_v38 = vunpack.c.l.bf16 %v148_v25  ;;  %v496_v41 = vunpack.c.l.bf16 %v149_v30 }
  0x14   : > { %v166_v26 = vmul.f32 %v468_v11, %v150_v19  ;;  %v174_v27 = vmul.f32 %v470_v12, %v150_v19  ;;  %v198_v28 = vmul.f32 %v472_v13, %v150_v19  ;;  %v234_v32 = vmul.f32 %v474_v17, %v151_v22 }
  0x15   : > { %v258_v36 = vmul.f32 %v476_v20, %v151_v22  ;;  %v294_v37 = vmul.f32 %v478_v21, %v152_v23  ;;  %v167_v39 = vmul.f32 %v468_v11, %v151_v22  ;;  %v175_v40 = vmul.f32 %v470_v12, %v151_v22 }
  0x16   : > { %v182_v34 = vrot.slane %v174_v27, 1  ;;  %v206_v35 = vrot.slane %v198_v28, 2  ;;  %v222_v43 = vmul.f32 %v480_v24, %v151_v22  ;;  %v318_v44 = vmul.f32 %v485_v29, %v152_v23 }
  0x17   : > { %v199_v45 = vmul.f32 %v472_v13, %v151_v22  ;;  %v242_v46 = vrot.slane %v234_v32, 1  ;;  %v282_v47 = vmul.f32 %v488_v33, %v152_v23  ;;  %v183_v48 = vrot.slane %v175_v40, 1 }
  0x18   : > { %v190_v42 = vadd.f32 %v182_v34, %v166_v26  ;;  %v235_v49 = vmul.f32 %v474_v17, %v152_v23  ;;  %v266_v51 = vrot.slane %v258_v36, 2  ;;  %v302_v52 = vrot.slane %v294_v37, 1 }
  0x19   : > { %v207_v53 = vrot.slane %v199_v45, 2  ;;  %v191_v54 = vadd.f32 %v183_v48, %v167_v39  ;;  %v223_v55 = vmul.f32 %v480_v24, %v152_v23  ;;  %v259_v56 = vmul.f32 %v476_v20, %v152_v23 }
  0x1a   : > { %v214_v50 = vadd.f32 %v206_v35, %v190_v42  ;;  %v295_v57 = vmul.f32 %v478_v21, %v153_v31  ;;  %v326_v59 = vrot.slane %v318_v44, 2  ;;  %v168_v60 = vmul.f32 %v468_v11, %v152_v23 }
  0x1b   : > { %v176_v61 = vmul.f32 %v470_v12, %v152_v23  ;;  %v215_v62 = vadd.f32 %v207_v53, %v191_v54  ;;  %v243_v63 = vrot.slane %v235_v49, 1  ;;  %v319_v0 = vmul.f32 %v485_v29, %v153_v31 }
  0x1c   : > { %v226_v58 = vadd.f32 %v222_v43, %v214_v50  ;;  %v200_v1 = vmul.f32 %v472_v13, %v152_v23  ;;  %v283_v3 = vmul.f32 %v488_v33, %v153_v31  ;;  %v236_v5 = vmul.f32 %v474_v17, %v153_v31 }
  0x1d   : > { %v184_v4 = vrot.slane %v176_v61, 1  ;;  %v227_v6 = vadd.f32 %v223_v55, %v215_v62  ;;  %v267_v7 = vrot.slane %v259_v56, 2  ;;  %v303_v8 = vrot.slane %v295_v57, 1 }
  0x1e   : > { %v250_v2 = vadd.f32 %v242_v46, %v226_v58  ;;  %v208_v9 = vrot.slane %v200_v1, 2  ;;  %v224_v15 = vmul.f32 %v480_v24, %v153_v31  ;;  %v260_v16 = vmul.f32 %v476_v20, %v153_v31 }
  0x1f   : > { %v192_v14 = vadd.f32 %v184_v4, %v168_v60  ;;  %v251_v18 = vadd.f32 %v243_v63, %v227_v6  ;;  %v327_v19 = vrot.slane %v319_v0, 2  ;;  %v169_v22 = vmul.f32 %v468_v11, %v153_v31 }
  0x20   : > { %v274_v10 = vadd.f32 %v266_v51, %v250_v2  ;;  %v177_v23 = vmul.f32 %v470_v12, %v153_v31  ;;  %v244_v27 = vrot.slane %v236_v5, 1  ;;  %v201_v28 = vmul.f32 %v472_v13, %v153_v31 }
  0x21   : > { %v216_v26 = vadd.f32 %v208_v9, %v192_v14  ;;  %v275_v30 = vadd.f32 %v267_v7, %v251_v18  ;;  %v296_v32 = vmul.f32 %v478_v21, %v492_v38  ;;  %v237_v35 = vmul.f32 %v474_v17, %v492_v38 }
  0x22   : > { %v286_v25 = vadd.f32 %v282_v47, %v274_v10  ;;  %v185_v34 = vrot.slane %v177_v23, 1  ;;  %v268_v39 = vrot.slane %v260_v16, 2  ;;  %v209_v11 = vrot.slane %v201_v28, 2 }
  0x23   : > { %v228_v37 = vadd.f32 %v224_v15, %v216_v26  ;;  %v287_v40 = vadd.f32 %v283_v3, %v275_v30  ;;  %v225_v42 = vmul.f32 %v480_v24, %v492_v38  ;;  %v261_v13 = vmul.f32 %v476_v20, %v492_v38 }
  0x24   : > { %v310_v36 = vadd.f32 %v302_v52, %v286_v25  ;;  %v193_v12 = vadd.f32 %v185_v34, %v169_v22  ;;  %v284_v44 = vmul.f32 %v488_v33, %v492_v38  ;;  %v320_v17 = vmul.f32 %v485_v29, %v492_v38 }
  0x25   : > { %v252_v43 = vadd.f32 %v244_v27, %v228_v37  ;;  %v311_v45 = vadd.f32 %v303_v8, %v287_v40  ;;  %v245_v46 = vrot.slane %v237_v35, 1  ;;  %v304_v48 = vrot.slane %v296_v32, 1 }
  0x26   : > { %v334_v31 = vadd.f32 %v326_v59, %v310_v36  ;;  %v217_v24 = vadd.f32 %v209_v11, %v193_v12  ;;  %v269_v51 = vrot.slane %v261_v13, 2  ;;  %v297_v38 = vmul.f32 %v478_v21, %v496_v41 }
  0x27   : > { %v276_v47 = vadd.f32 %v268_v39, %v252_v43  ;;  %v335_v49 = vadd.f32 %v327_v19, %v311_v45  ;;  %v328_v53 = vrot.slane %v320_v17, 2  ;;  %v285_v56 = vmul.f32 %v488_v33, %v496_v41 }
  0x28   : > { %v338_v20 = vpack.c.bf16 %v334_v31, %v334_v31  ;;  %v229_v50 = vadd.f32 %v225_v42, %v217_v24  ;;  %v321_v57 = vmul.f32 %v485_v29, %v496_v41  ;;  %v305_v60 = vrot.slane %v297_v38, 1 }
  0x29   : > { %v288_v52 = vadd.f32 %v284_v44, %v276_v47  ;;  %v339_v54 = vpack.c.bf16 %v335_v49, %v335_v49 }
  0x2a   : > { %343 = vst.msk [vmem:[%s533_s24] sm:$0x3] %vm342_vm0, %v338_v20  ;;  %v253_v55 = vadd.f32 %v245_v46, %v229_v50  ;;  %v329_v62 = vrot.slane %v321_v57, 2 }
  0x2b   : > { %v312_v58 = vadd.f32 %v304_v48, %v288_v52  ;;  %344 = vst.msk [vmem:[%s533_s24 + $0x2] sm:$0x3] %vm342_vm0, %v339_v54 }
  0x2c   : > { %v277_v59 = vadd.f32 %v269_v51, %v253_v55 }
  0x2d   : > { %v336_v21 = vadd.f32 %v328_v53, %v312_v58 }
  0x2e   : > { %v289_v61 = vadd.f32 %v285_v56, %v277_v59 }
  0x2f   : > { %v340_v63 = vpack.c.bf16 %v336_v21, %v336_v21 }
  0x30   : > { %v313_v0 = vadd.f32 %v305_v60, %v289_v61 }
  0x31   : > { %345 = vst.msk [vmem:[%s533_s24 + $0x4] sm:$0x3] %vm342_vm0, %v340_v63 }
  0x32   : > { %v337_v1 = vadd.f32 %v329_v62, %v313_v0 }
  0x34   : > { %v341_v2 = vpack.c.bf16 %v337_v1, %v337_v1 }
  0x36   : > { %346 = vst.msk [vmem:[%s533_s24 + $0x6] sm:$0x3] %vm342_vm0, %v341_v2 }
  0x37 PF: > { %s12_s9 = sadd.s32 1, %s428_s9  }
  0x38   : > { %p9_p4 = scmp.ge.s32.totalorder %s12_s9, 4  }
  0x3a   :  { %11 = sbr.rel (!%p9_p4) target bundleno = 1 (0x1), region = 58 }

// kernel: localvit_forward.14
= control target key start
LH: loop header
LB: loop body
LE: loop exit
PB: predicated region body
PF: predicated region fallthrough
CT: control target
= control target key end

     0   :  { %vm67_vm0 = vcmask 523264   ;;  %vm267_vm1 = vcmask 257024   ;;  %s439_s2 = inlined_call_operand.vmem [shape: bf16[64,64], index: 2, kind: input, shape index: {}]   ;;  %s440_s0 = inlined_call_operand.vmem [shape: bf16[32,64], index: 0, kind: input, shape index: {}]   ;;  %s441_s3 = inlined_call_operand.vmem [shape: bf16[64,32], index: 3, kind: input, shape index: {}]   ;;  %s442_s1 = inlined_call_operand.vmem [shape: bf16[32,32], index: 1, kind: input, shape index: {}]   ;;  %s443_s4 = inlined_call_operand.vmem [shape: f32[1,32], index: 4, kind: input, shape index: {}]   ;;  %s444_s5 = inlined_call_operand.vmem [shape: bf16[32,32], index: 5, kind: output, shape index: {}]  }
   0x1   :  { %v344_v0 = vld [vmem:[%s439_s2] sm:$0xff]   ;;  %v345_v1 = vld [vmem:[%s439_s2 + $0x8] sm:$0xff]   ;;  %v346_v2 = vld [vmem:[%s439_s2 + $0x10] sm:$0xff]  }
   0x2   :  { %320 = vmatprep.subr.bf16.mxu0 %v344_v0  ;;  %v348_v3 = vld [vmem:[%s440_s0] sm:$0xff]   ;;  %v347_v4 = vld [vmem:[%s439_s2 + $0x18] sm:$0xff]   ;;  %v349_v5 = vld [vmem:[%s440_s0 + $0x8] sm:$0xff]  }
   0x3   :  { %321 = vmatpush3.bf16.msra.mxu0 %v344_v0  ;;  %328 = vmatprep.mubr.msk.bf16.mxu0 %vm67_vm0, %v348_v3  ;;  %v350_v6 = vld [vmem:[%s441_s3] sm:$0xff]   ;;  %v351_v7 = vld [vmem:[%s441_s3 + $0x8] sm:$0xff]   ;;  %v352_v8 = vld [vmem:[%s441_s3 + $0x10] sm:$0xff]  }
   0x4   :  { %322 = vmatprep.subr.bf16.mxu0 %v345_v1  ;;  %332 = vmatprep.subr.bf16.mxu1 %v350_v6  ;;  %v353_v9 = vld [vmem:[%s441_s3 + $0x18] sm:$0xff]   ;;  %v307_v36 = vld [vmem:[%s442_s1 + $0x8] sm:$0xff]   ;;  %v300_v37 = vld [vmem:[%s442_s1] sm:$0xff]  }
   0x5   :  { %333 = vmatpush3.bf16.msra.mxu1 %v350_v6  ;;  %v284_v38 = vld [vmem:[%s443_s4] ss:$0 sm:$0xff]  ;;  %v305_v39 = vunpack.c.l.bf16 %v307_v36  ;;  %v301_v41 = vunpack.c.l.bf16 %v300_v37  ;;  %v306_v44 = vunpack.c.h.bf16 %v307_v36  ;;  %v302_v47 = vunpack.c.h.bf16 %v300_v37 }
   0x6   :  { %334 = vmatprep.subr.bf16.mxu1 %v351_v7 }
   0x7   :  { %323 = vmatpush3.bf16.msra.mxu0 %v345_v1 }
   0x8   :  { %324 = vmatprep.subr.bf16.mxu0 %v346_v2 }
   0x9   :  { %335 = vmatpush3.bf16.msra.mxu1 %v351_v7 }
   0xa   :  { %336 = vmatprep.subr.bf16.mxu1 %v352_v8 }
   0xb   :  { %325 = vmatpush3.bf16.msra.mxu0 %v346_v2 }
   0xc   :  { %326 = vmatprep.subr.bf16.mxu0 %v347_v4 }
   0xd   :  { %337 = vmatpush3.bf16.msra.mxu1 %v352_v8 }
   0xe   :  { %338 = vmatprep.subr.bf16.mxu1 %v353_v9 }
   0xf   :  { %327 = vmatpush3.bf16.msra.mxu0 %v347_v4 }
  0x11   :  { %339 = vmatpush3.bf16.msra.mxu1 %v353_v9 }
  0x12   :  { %329 = vmatmul.mubr.msk.bf16.vlgmr.msra.gmra.mrb[0].mxu0 %vm67_vm0, %v349_v5 }
  0xe5   :  { %v330_v10 = vpop.f32.mrb[0].mxu0 }
  0xe6   :  { %v125_v11 = vadd.f32 3.0, %v330_v10  ;;  %v108_v12 = vpop.f32.mrb[1].mxu0 }
  0xe7   :  { %v123_v13 = vadd.f32 3.0, %v108_v12  ;;  %v331_v14 = vpop.f32.mrb[2].mxu0 }
  0xe8   :  { %v129_v15 = vmax.f32 %v125_v11, 0.0  ;;  %v126_v16 = vadd.f32 3.0, %v331_v14  ;;  %v111_v17 = vpop.f32.mrb[3].mxu0 }
  0xe9   :  { %v127_v18 = vmax.f32 %v123_v13, 0.0  ;;  %v124_v19 = vadd.f32 3.0, %v111_v17 }
  0xea   :  { %v133_v20 = vmin.f32 %v129_v15, 6.0  ;;  %v130_v21 = vmax.f32 %v126_v16, 0.0 }
  0xeb   :  { %v131_v22 = vmin.f32 %v127_v18, 6.0  ;;  %v128_v23 = vmax.f32 %v124_v19, 0.0 }
  0xec   :  { %v137_v24 = vmul.f32 %v330_v10, %v133_v20  ;;  %v134_v25 = vmin.f32 %v130_v21, 6.0 }
  0xed   :  { %v135_v26 = vmul.f32 %v131_v22, %v108_v12  ;;  %v132_v27 = vmin.f32 %v128_v23, 6.0 }
  0xee   :  { %v138_v28 = vmul.f32 %v331_v14, %v134_v25  ;;  %v141_v30 = vmul.f32 0.16666667, %v137_v24 }
  0xef   :  { %v136_v29 = vmul.f32 %v132_v27, %v111_v17  ;;  %v139_v32 = vmul.f32 0.16666667, %v135_v26 }
  0xf0   :  { %v142_v31 = vmul.f32 0.16666667, %v138_v28 }
  0xf1   :  { %v140_v33 = vmul.f32 0.16666667, %v136_v29 }
  0xf2   :  { %v144_v34 = vpack.c.bf16 %v142_v31, %v141_v30 }
  0xf3   :  { %v143_v35 = vpack.c.bf16 %v140_v33, %v139_v32 }
  0xf5   :  { %340 = vmatprep.mubr.msk.bf16.mxu1 %vm67_vm0, %v143_v35 }
  0xf6   :  { %341 = vmatmul.mubr.msk.bf16.vlgmr.msra.gmra.mrb[0].mxu1 %vm67_vm0, %v144_v34 }
 0x1c9   :  { %v342_v40 = vpop.f32.mrb[0].mxu1 }
 0x1ca   :  { %v233_v42 = vadd.f32 %v342_v40, %v284_v38  ;;  %v224_v43 = vpop.f32.mrb[1].mxu1 }
 0x1cb   :  { %v225_v45 = vadd.f32 %v284_v38, %v224_v43  ;;  %v343_v46 = vpop.f32.mrb[2].mxu1 }
 0x1cc   :  { %v249_v48 = vadd.f32 %v305_v39, %v233_v42  ;;  %v236_v49 = vadd.f32 %v343_v46, %v284_v38  ;;  %v227_v50 = vpop.f32.mrb[3].mxu1 }
 0x1cd   :  { %v247_v51 = vadd.f32 %v301_v41, %v225_v45  ;;  %v228_v52 = vadd.f32 %v284_v38, %v227_v50 }
 0x1ce   :  { %v297_v53 = vpack.c.bf16 %v249_v48, %v249_v48  ;;  %v250_v54 = vadd.f32 %v306_v44, %v236_v49 }
 0x1cf   :  { %v295_v55 = vpack.c.bf16 %v247_v51, %v247_v51  ;;  %v248_v56 = vadd.f32 %v302_v47, %v228_v52 }
 0x1d0   :  { %270 = vst.msk [vmem:[%s444_s5 + $0x8] sm:$0xf] %vm267_vm1, %v297_v53  ;;  %v298_v57 = vpack.c.bf16 %v250_v54, %v250_v54 }
 0x1d1   :  { %268 = vst.msk [vmem:[%s444_s5] sm:$0xf] %vm267_vm1, %v295_v55  ;;  %v296_v58 = vpack.c.bf16 %v248_v56, %v248_v56 }
 0x1d2   :  { %271 = vst.msk [vmem:[%s444_s5 + $0xc] sm:$0xf] %vm267_vm1, %v298_v57 }
 0x1d3   :  { %269 = vst.msk [vmem:[%s444_s5 + $0x4] sm:$0xf] %vm267_vm1, %v296_v58 }

// kernel: localvit_forward.17
= control target key start
LH: loop header
LB: loop body
LE: loop exit
PB: predicated region body
PF: predicated region fallthrough
CT: control target
= control target key end

     0   :  { %vm24_vm0 = vcmask 254976   ;;  %s250_s0 = inlined_call_operand.vmem [shape: bf16[2,32], index: 0, kind: input, shape index: {}]   ;;  %s251_s1 = inlined_call_operand.vmem [shape: f32[1,32], index: 1, kind: input, shape index: {}]   ;;  %s252_s2 = inlined_call_operand.vmem [shape: f32[1,32], index: 2, kind: input, shape index: {}]   ;;  %s253_s3 = inlined_call_operand.vmem [shape: bf16[32,10], index: 3, kind: input, shape index: {}]   ;;  %s254_s4 = inlined_call_operand.vmem [shape: f32[1,10], index: 4, kind: input, shape index: {}]   ;;  %s255_s5 = inlined_call_operand.hbm [shape: f32[2,10], index: 5, kind: output, shape index: {}]  }
   0x1   :  { %v22_v0 = vld [vmem:[%s250_s0] sm:$0x1] }
   0x2   :  { %v23_v1 = vunpack.c.l.bf16 %v22_v0 }
   0x3   :  { %10 = vsyncpa [#allocation3], 0  ;;  %v159_v8 = vld [vmem:[%s253_s3] sm:$0xff]   ;;  %v187_v9 = vmov 0.0   ;;  %v160_v10 = vld [vmem:[%s253_s3 + $0x8] sm:$0xff]   ;;  %vm188_vm1 = vmmov 0  }
   0x4   :  { %v25_v2 = vsel %vm24_vm0, %v23_v1, 0.0  ;;  %148 = vmatprep.subr.bf16.mxu0 %v187_v9  ;;  %152 = vmatprep.mubr.msk.bf16.mxu0 %vm188_vm1, %v187_v9  ;;  %v139_v15 = vld [vmem:[%s251_s1] ss:$0 sm:$0xff]  ;;  %vm79_vm2 = vcmask 261120   ;;  %s189_s28 = smov [#allocation2]   ;;  %vm123_vm3 = vcmask 74752  }
   0x5   :  { %26 = vadd.xlane.f32.xlu0 %v25_v2  ;;  %149 = vmatpush3.bf16.msra.mxu0 %v159_v8  ;;  %v140_v17 = vld [vmem:[%s252_s2] ss:$0 sm:$0xff]  ;;  %s131_s29 = sshll.u32 %s189_s28, 4  ;;  %s132_s29 = int_to_ptr.vmem [resolvable:$true] %s131_s29 }
   0x6   :  { %150 = vmatprep.subr.bf16.mxu0 %v187_v9  ;;  %v141_v21 = vld [vmem:[%s254_s4] ss:$0 sm:$0xff]  ;;  %s163_s1 = scalar_lea.vmem %s132_s29, 32  ;;  %p168_p1 = scmp.lt.s32.totalorder %s132_s29, %s132_s29 }
   0x7   :  { %p164_p0 = scmp.ne.s32.totalorder %s132_s29, %s163_s1  ;;  %p169_p2 = scmp.lt.s32.totalorder %s163_s1, %s163_s1 }
   0x9   :  { %151 = vmatpush3.bf16.msra.mxu0 %v160_v10  ;;  %p170_p3 = por %p169_p2, %p168_p1 }
   0xb   :  { %p171_p4 = pnand %p170_p3, %p164_p0 }
  0x92   :  { %v27_v3 = vpop.xlane.xlu0 %26 }
  0x93   :  { %v29_v4 = vmul.f32 0.03125, %v27_v3 }
  0x95   :  { %v30_v5 = vsub.f32 %v23_v1, %v29_v4 }
  0x97   :  { %v31_v6 = vmul.f32 %v30_v5, %v30_v5 }
  0x99   :  { %v32_v7 = vsel %vm24_vm0, %v31_v6, 0.0 }
  0x9a   :  { %33 = vadd.xlane.f32.xlu0 %v32_v7 }
 0x127   :  { %v34_v11 = vpop.xlane.xlu0 %33 }
 0x128   :  { %v35_v12 = vmul.f32 0.03125, %v34_v11 }
 0x12a   :  { %v36_v13 = vadd.f32 1e-05, %v35_v12 }
 0x12c   :  { %161 = vrsqrt.f32 %v36_v13 }
 0x136   :  { %v162_v14 = vpop.eup %161 }
 0x137   :  { %v38_v16 = vmul.f32 %v162_v14, %v30_v5 }
 0x139   :  { %v46_v18 = vmul.f32 %v139_v15, %v38_v16 }
 0x13b   :  { %v54_v19 = vadd.f32 %v140_v17, %v46_v18 }
 0x13d   :  { %v55_v20 = vpack.c.bf16 %v54_v19, %v54_v19 }
 0x13f   :  { %153 = vmatmul.mubr.msk.bf16.vlgmr.msra.gmra.mrb[0].mxu0 %vm79_vm2, %v55_v20 }
 0x212   :  { %v117_v22 = vpop.f32.mrb[0].mxu0 }
 0x213   :  { %v118_v23 = vadd.f32 %v141_v21, %v117_v22  ;;  %v154_v24 = vpop.f32.mrb[1].mxu0 }
 0x214   :  { %v120_v25 = vpop.f32.mrb[2].mxu0 }
 0x215   :  { %v155_v26 = vpop.f32.mrb[3].mxu0  ;;  %124 = vst.msk [vmem:[#allocation2] sm:$0x3] %vm123_vm3, %v118_v23 }
 0x216   :  { %174 = shalt.err (!%p171_p4)
}
 0x217   :  { %s175_s4 = scalar_lea.hbm %s255_s5, 32 }
 0x218   :  { %p176_p5 = scmp.ne.s32.totalorder %s255_s5, %s175_s4  ;;  %p179_p6 = scmp.lt.u32.totalorder %s175_s4, %s255_s5 }
 0x21a   :  { %p181_p7 = pnand %p179_p6, %p176_p5 }
 0x21c   :  { %184 = shalt.err (!%p181_p7)
}
 0x21d   :  { %134 = dma.vmem_to_hbm [thread:$0]  %s132_s29, 32, %s255_s5, [#allocation3]  }
 0x21e   :  { %185 = dma.done.wait [#allocation3], 32  }
 0x21f   :  { %186 = vsyncadd [#allocation3], 4294967264 }
 0x220   :  { %138 = vsyncpa [#allocation3], 1 }

</bundles_post_ra>
